<compile_context>
chip_gen: v7x
topology: tpu7x:2x2x1
jax: 0.10.0
libtpu: 0.0.40
codegen_flags: <defaults>
</compile_context>

<pallas_src>
import jax
import jax.numpy as jnp
import numpy as np
from jax.experimental import pallas as pl
from jax.experimental.pallas import tpu as pltpu

# ---- scalar entries of the synthetic `par` dict ----
DT = 100.0                     # ms
DT_SEC = DT / 1000.0           # par['dt_sec']
ALPHA_NEURON = 0.2             # par['alpha_neuron']
NOISE_RNN = 0.05               # par['noise_rnn']
EXC_FRAC = 0.8                 # fraction of excitatory units for the EI matrix


def rnn_kernel(drive_ref, w_rnn_ref,
               h0_ref, sx0_ref, su0_ref,
               a_ref, c_ref, d_ref, e_ref, f_ref,
               h_out_ref, sx_out_ref, su_out_ref,
               h_sc, sx_sc, su_sc):
    """Serial STP-RNN recurrence for one (batch block, time block) grid cell.

    drive_ref : (T_BLK, B_BLK, H)  pre-folded ALPHA*(x@relu(w_in)+b_rnn)+noise
    w_rnn_ref : (H, H) bf16        ALPHA_NEURON * EI @ relu(w_rnn)
    a..f_ref  : (1, H)             folded STP coefficient vectors
    """
    t_blk, Bb, H = drive_ref.shape

    # initialize the recurrent state at the first time block of this batch block
    @pl.when(pl.program_id(1) == 0)
    def _():
        h_sc[...] = h0_ref[...]
        sx_sc[...] = sx0_ref[...]
        su_sc[...] = su0_ref[...]

    # state lives in vregs for the duration of this time block
    h = h_sc[...]
    syn_x = sx_sc[...]
    syn_u = su_sc[...]

    # broadcast the (1, H) coefficient vectors once per block, outside the loop
    A = jnp.broadcast_to(a_ref[...], (Bb, H))   # alpha_std * dyn
    C = jnp.broadcast_to(c_ref[...], (Bb, H))   # dt_sec * dyn
    D = jnp.broadcast_to(d_ref[...], (Bb, H))   # alpha_stf * U * dyn
    E = jnp.broadcast_to(e_ref[...], (Bb, H))   # alpha_stf * dyn
    F = jnp.broadcast_to(f_ref[...], (Bb, H))   # dt_sec * U * dyn

    w_rnn = w_rnn_ref[...]                      # bf16, ALPHA_NEURON already folded in
    one_minus_alpha = 1.0 - ALPHA_NEURON

    # fully unrolled recurrence; only h_post @ w_rnn sits on the serial path
    for t in range(t_blk):
        # short-term synaptic plasticity (synapse_config is not None)
        syn_x = syn_x + A * (1.0 - syn_x) - C * (syn_u * syn_x * h)
        syn_u = syn_u + D - E * syn_u + F * ((1.0 - syn_u) * h)
        syn_x = jnp.minimum(1.0, jnp.maximum(syn_x, 0.0))   # min(1, relu(.))
        syn_u = jnp.minimum(1.0, jnp.maximum(syn_u, 0.0))
        h_post = syn_u * syn_x * h

        # leaky-relu RNN cell; bf16 operands -> MXU-native, f32 accumulation
        rec = jnp.dot(h_post.astype(jnp.bfloat16), w_rnn,
                      preferred_element_type=jnp.float32)
        h = jnp.maximum(h * one_minus_alpha + drive_ref[t] + rec, 0.0)

        # lane-dense per-step stores (H is a multiple of 128)
        h_out_ref[t] = h
        sx_out_ref[t] = syn_x
        su_out_ref[t] = syn_u

    # carry state into the next time block
    h_sc[...] = h
    sx_sc[...] = syn_x
    su_sc[...] = syn_u


def _pick_b_block(B):
    # Split the batch into two blocks when possible so v7x's two TensorCores can
    # each run half of the independent recurrences ("parallel" grid axis); keep
    # blocks a multiple of 8 so (B_blk, H) state tiles stay (8, 128)-aligned.
    if B % 16 == 0:
        return B // 2
    return B


def _pick_t_block(T, B_blk, H, budget_bytes=8 << 20, max_unroll=32):
    # Size the time block from a per-block VMEM budget (conservative for v7x's
    # 64 MiB physical / 32 MiB default scoped VMEM) and cap the unroll factor so
    # vreg pressure stays bounded.  Ragged T is handled by padding, not T_BLK=1.
    per_t = (1 + 3) * B_blk * H * 4 * 2   # drive in + 3 state outs, 2x buffered, f32
    cap = max(1, budget_bytes // per_t)
    return int(min(T, cap, max_unroll))


@jax.jit
def run_rnn(x, noise, params):
    T, B, n_in = x.shape
    H = params["w_rnn"].shape[0]

    # ---------- time-invariant / time-parallel work hoisted to XLA ----------
    w_in_eff = jnp.maximum(params["w_in"], 0.0)
    w_out_eff = jnp.maximum(params["w_out"], 0.0)
    w_rnn_eff = jnp.dot(params["EI_matrix"], jnp.maximum(params["w_rnn"], 0.0),
                        preferred_element_type=jnp.float32)
    # fold alpha_neuron into the recurrent weights; bf16 halves VMEM footprint
    w_rnn_k = (ALPHA_NEURON * w_rnn_eff).astype(jnp.bfloat16)

    # pre-folded per-step drive: alpha*(x @ relu(w_in) + b_rnn) + noise*NOISE_RNN
    drive = (ALPHA_NEURON * (jnp.einsum("tbi,ih->tbh", x, w_in_eff,
                                        preferred_element_type=jnp.float32)
                             + params["b_rnn"])
             + NOISE_RNN * noise)

    # folded STP coefficient vectors, all (1, H)
    dyn = params["dynamic_synapse"]
    a_vec = params["alpha_std"] * dyn
    c_vec = DT_SEC * dyn
    d_vec = params["alpha_stf"] * params["U"] * dyn
    e_vec = params["alpha_stf"] * dyn
    f_vec = DT_SEC * params["U"] * dyn

    # ---------- blocking ----------
    B_BLK = _pick_b_block(B)
    n_b = B // B_BLK
    T_BLK = _pick_t_block(T, B_BLK, H)
    n_t = pl.cdiv(T, T_BLK)
    T_pad = n_t * T_BLK
    if T_pad != T:
        drive = jnp.pad(drive, ((0, T_pad - T), (0, 0), (0, 0)))

    seq_spec = pl.BlockSpec((T_BLK, B_BLK, H), lambda b, t: (t, b, 0))
    state_spec = pl.BlockSpec((B_BLK, H), lambda b, t: (b, 0))

    def const_spec(shape):
        # time/batch-invariant parameter, same (whole-array) block every step.
        # TODO(synk): single-buffer these (pipeline_mode=pl.Buffered(1)) for
        # large H on v7x; at demo sizes double-buffering them is negligible.
        return pl.BlockSpec(shape, lambda b, t: tuple(0 for _ in shape))

    out_shapes = (
        jax.ShapeDtypeStruct((T_pad, B, H), jnp.float32),   # h
        jax.ShapeDtypeStruct((T_pad, B, H), jnp.float32),   # syn_x
        jax.ShapeDtypeStruct((T_pad, B, H), jnp.float32),   # syn_u
    )

    grid_spec = pltpu.PrefetchScalarGridSpec(
        num_scalar_prefetch=0,
        grid=(n_b, n_t),
        in_specs=[
            seq_spec,                 # drive
            const_spec((H, H)),       # ALPHA * EI @ relu(w_rnn), bf16
            state_spec,               # h init
            state_spec,               # syn_x init
            state_spec,               # syn_u init
            const_spec((1, H)),       # alpha_std * dyn
            const_spec((1, H)),       # dt_sec * dyn
            const_spec((1, H)),       # alpha_stf * U * dyn
            const_spec((1, H)),       # alpha_stf * dyn
            const_spec((1, H)),       # dt_sec * U * dyn
        ],
        out_specs=[seq_spec, seq_spec, seq_spec],
        scratch_shapes=[pltpu.VMEM((B_BLK, H), jnp.float32)] * 3,
    )

    h_all, sx_all, su_all = pl.pallas_call(
        rnn_kernel,
        out_shape=out_shapes,
        grid_spec=grid_spec,
        compiler_params=pltpu.CompilerParams(
            # batch blocks are independent (megacore-parallel on v7x);
            # time is the sequential recurrence axis
            dimension_semantics=("parallel", "arbitrary"),
            vmem_limit_bytes=32 * 1024 * 1024),
    )(drive, w_rnn_k,
      params["h0"], params["syn_x_init"], params["syn_u_init"],
      a_vec, c_vec, d_vec, e_vec, f_vec)

    h_all, sx_all, su_all = h_all[:T], sx_all[:T], su_all[:T]

    # readout hoisted out of the kernel: one lane-dense XLA matmul over (T*B, H)
    y = (jnp.einsum("tbh,ho->tbo", h_all, w_out_eff,
                    preferred_element_type=jnp.float32)
         + params["b_out"])
    return h_all, sx_all, su_all, y


def reference(x, noise, params):
    """Pure-JAX f32 reference (mirrors the PyTorch forward loop exactly)."""
    w_rnn_eff = jnp.dot(params["EI_matrix"], jnp.maximum(params["w_rnn"], 0.0))
    w_in = jnp.maximum(params["w_in"], 0.0)
    w_out = jnp.maximum(params["w_out"], 0.0)

    def step(carry, inp):
        h, sx, su = carry
        x_t, n_t = inp
        sx = sx + (params["alpha_std"] * (1 - sx)
                   - DT_SEC * su * sx * h) * params["dynamic_synapse"]
        su = su + (params["alpha_stf"] * (params["U"] - su)
                   + DT_SEC * params["U"] * (1 - su) * h) * params["dynamic_synapse"]
        sx = jnp.minimum(1.0, jnp.maximum(sx, 0.0))
        su = jnp.minimum(1.0, jnp.maximum(su, 0.0))
        h_post = su * sx * h
        h = jnp.maximum(
            h * (1 - ALPHA_NEURON)
            + ALPHA_NEURON * (x_t @ w_in + h_post @ w_rnn_eff + params["b_rnn"])
            + n_t * NOISE_RNN, 0.0)
        y = h @ w_out + params["b_out"]
        return (h, sx, su), (h, sx, su, y)

    init = (params["h0"], params["syn_x_init"], params["syn_u_init"])
    _, (hs, sxs, sus, ys) = jax.lax.scan(step, init, (x, noise))
    return hs, sxs, sus, ys


def make_params(key, B, n_in, H, n_out):
    ks = jax.random.split(key, 6)
    n_exc = int(EXC_FRAC * H)
    ei_diag = jnp.concatenate([jnp.ones((n_exc,)), -jnp.ones((H - n_exc,))])
    params = {
        "w_in": 0.1 * jax.random.gamma(ks[0], 0.25, (n_in, H)).astype(jnp.float32),
        "w_rnn": 0.1 * jax.random.gamma(ks[1], 0.1, (H, H)).astype(jnp.float32),
        "b_rnn": jnp.zeros((1, H), jnp.float32),
        "w_out": 0.1 * jax.random.gamma(ks[2], 0.25, (H, n_out)).astype(jnp.float32),
        "b_out": jnp.zeros((1, n_out), jnp.float32),
        "EI_matrix": jnp.diag(ei_diag).astype(jnp.float32),
        # par['h0'] is (1, H) in the original; broadcast to (B, H) here
        "h0": jnp.broadcast_to(
            0.1 * jax.random.uniform(ks[3], (1, H)), (B, H)).astype(jnp.float32),
        "syn_x_init": jnp.ones((B, H), jnp.float32),
        "syn_u_init": jnp.full((B, H), 0.3, jnp.float32),
        "alpha_std": jnp.full((1, H), DT / 1500.0, jnp.float32),
        "alpha_stf": jnp.full((1, H), DT / 200.0, jnp.float32),
        "U": jnp.full((1, H), 0.45, jnp.float32),
        "dynamic_synapse": jnp.ones((1, H), jnp.float32),
    }
    return params


if __name__ == "__main__":
    # H = 128 keeps per-step h / syn_x / syn_u stores lane-dense.  B = 32 is a
    # small demo batch (multiple of 16 -> two "parallel" batch blocks); for real
    # throughput use B >= 128 per core so the MXU M dimension is filled.
    T, B, n_in, H, n_out = 8, 32, 16, 128, 8

    key = jax.random.PRNGKey(0)
    k_par, k_x, k_noise, k_tgt = jax.random.split(key, 4)
    params = make_params(k_par, B, n_in, H, n_out)

    # input_data: (T, B, n_in), time-major like torch's unbind(0)
    x = jax.random.uniform(k_x, (T, B, n_in), jnp.float32)
    # pre-sampled noise standing in for torch.randn_like(h) each step
    noise = jax.random.normal(k_noise, (T, B, H), jnp.float32)
    # target_data / mask are accepted by the torch forward but never used in it
    target_data = jax.random.uniform(k_tgt, (T, B, n_out), jnp.float32)
    mask = jnp.ones((T, B, n_out), jnp.float32)
    del target_data, mask  # unused, matching the reference forward pass

    h_k, sx_k, su_k, y_k = jax.block_until_ready(run_rnn(x, noise, params))
    h_r, sx_r, su_r, y_r = jax.block_until_ready(reference(x, noise, params))

    # tolerances are loose only to admit the bf16 recurrent-matmul operands
    np.testing.assert_allclose(np.asarray(h_k), np.asarray(h_r), rtol=2e-2, atol=5e-3)
    np.testing.assert_allclose(np.asarray(sx_k), np.asarray(sx_r), rtol=2e-2, atol=5e-3)
    np.testing.assert_allclose(np.asarray(su_k), np.asarray(su_r), rtol=2e-2, atol=5e-3)
    np.testing.assert_allclose(np.asarray(y_k), np.asarray(y_r), rtol=2e-2, atol=5e-3)

    print("KERNEL_OK")
</pallas_src>

<mosaic_0001>
module attributes {stable_mosaic.version = 11 : i64} {
  func.func @rnn_kernel(%arg0: i32, %arg1: i32, %arg2: memref<8x16x128xf32, #tpu.memory_space<vmem>>, %arg3: memref<128x128xbf16, #tpu.memory_space<vmem>>, %arg4: memref<16x128xf32, #tpu.memory_space<vmem>>, %arg5: memref<16x128xf32, #tpu.memory_space<vmem>>, %arg6: memref<16x128xf32, #tpu.memory_space<vmem>>, %arg7: memref<1x128xf32, #tpu.memory_space<vmem>>, %arg8: memref<1x128xf32, #tpu.memory_space<vmem>>, %arg9: memref<1x128xf32, #tpu.memory_space<vmem>>, %arg10: memref<1x128xf32, #tpu.memory_space<vmem>>, %arg11: memref<1x128xf32, #tpu.memory_space<vmem>>, %arg12: memref<8x16x128xf32, #tpu.memory_space<vmem>>, %arg13: memref<8x16x128xf32, #tpu.memory_space<vmem>>, %arg14: memref<8x16x128xf32, #tpu.memory_space<vmem>>, %arg15: memref<16x128xf32, #tpu.memory_space<vmem>>, %arg16: memref<16x128xf32, #tpu.memory_space<vmem>>, %arg17: memref<16x128xf32, #tpu.memory_space<vmem>>) attributes {dimension_semantics = [#tpu.dimension_semantics<parallel>, #tpu.dimension_semantics<arbitrary>], iteration_bounds = array<i64: 2, 1>, scalar_prefetch = 0 : i64, scratch_operands = 3 : i64, tpu.core_type = #tpu.core_type<tc>, window_params = [{transform_indices = @transform_0, window_bounds = array<i64: 8, 16, 128>}, {pipeline_mode = #tpu.pipeline_mode<synchronous>, transform_indices = @transform_1, window_bounds = array<i64: 128, 128>}, {transform_indices = @transform_2, window_bounds = array<i64: 16, 128>}, {transform_indices = @transform_3, window_bounds = array<i64: 16, 128>}, {transform_indices = @transform_4, window_bounds = array<i64: 16, 128>}, {pipeline_mode = #tpu.pipeline_mode<synchronous>, transform_indices = @transform_5, window_bounds = array<i64: 1, 128>}, {pipeline_mode = #tpu.pipeline_mode<synchronous>, transform_indices = @transform_6, window_bounds = array<i64: 1, 128>}, {pipeline_mode = #tpu.pipeline_mode<synchronous>, transform_indices = @transform_7, window_bounds = array<i64: 1, 128>}, {pipeline_mode = #tpu.pipeline_mode<synchronous>, transform_indices = @transform_8, window_bounds = array<i64: 1, 128>}, {pipeline_mode = #tpu.pipeline_mode<synchronous>, transform_indices = @transform_9, window_bounds = array<i64: 1, 128>}, {transform_indices = @transform_10, window_bounds = array<i64: 8, 16, 128>}, {transform_indices = @transform_11, window_bounds = array<i64: 8, 16, 128>}, {transform_indices = @transform_12, window_bounds = array<i64: 8, 16, 128>}]} {
    %c0_i32 = arith.constant 0 : i32
    %0 = arith.cmpi eq, %arg1, %c0_i32 : i32
    %1 = arith.extui %0 : i1 to i32
    %c0_i32_0 = arith.constant 0 : i32
    %2 = arith.cmpi ne, %1, %c0_i32_0 : i32
    scf.if %2 {
      %c0_184 = arith.constant 0 : index
      %c0_185 = arith.constant 0 : index
      %385 = vector.load %arg4[%c0_184, %c0_185] : memref<16x128xf32, #tpu.memory_space<vmem>>, vector<16x128xf32>
      %c0_186 = arith.constant 0 : index
      %c0_187 = arith.constant 0 : index
      %386 = vector.load %arg15[%c0_186, %c0_187] : memref<16x128xf32, #tpu.memory_space<vmem>>, vector<16x128xf32>
      tpu.vector_store %arg15[%c0_186, %c0_187], %385 {strides = array<i32>} : memref<16x128xf32, #tpu.memory_space<vmem>>, vector<16x128xf32>,
      %c0_188 = arith.constant 0 : index
      %c0_189 = arith.constant 0 : index
      %387 = vector.load %arg5[%c0_188, %c0_189] : memref<16x128xf32, #tpu.memory_space<vmem>>, vector<16x128xf32>
      %c0_190 = arith.constant 0 : index
      %c0_191 = arith.constant 0 : index
      %388 = vector.load %arg16[%c0_190, %c0_191] : memref<16x128xf32, #tpu.memory_space<vmem>>, vector<16x128xf32>
      tpu.vector_store %arg16[%c0_190, %c0_191], %387 {strides = array<i32>} : memref<16x128xf32, #tpu.memory_space<vmem>>, vector<16x128xf32>,
      %c0_192 = arith.constant 0 : index
      %c0_193 = arith.constant 0 : index
      %389 = vector.load %arg6[%c0_192, %c0_193] : memref<16x128xf32, #tpu.memory_space<vmem>>, vector<16x128xf32>
      %c0_194 = arith.constant 0 : index
      %c0_195 = arith.constant 0 : index
      %390 = vector.load %arg17[%c0_194, %c0_195] : memref<16x128xf32, #tpu.memory_space<vmem>>, vector<16x128xf32>
      tpu.vector_store %arg17[%c0_194, %c0_195], %389 {strides = array<i32>} : memref<16x128xf32, #tpu.memory_space<vmem>>, vector<16x128xf32>,
    } else {
    }
    %c0 = arith.constant 0 : index
    %c0_1 = arith.constant 0 : index
    %3 = vector.load %arg15[%c0, %c0_1] : memref<16x128xf32, #tpu.memory_space<vmem>>, vector<16x128xf32>
    %c0_2 = arith.constant 0 : index
    %c0_3 = arith.constant 0 : index
    %4 = vector.load %arg16[%c0_2, %c0_3] : memref<16x128xf32, #tpu.memory_space<vmem>>, vector<16x128xf32>
    %c0_4 = arith.constant 0 : index
    %c0_5 = arith.constant 0 : index
    %5 = vector.load %arg17[%c0_4, %c0_5] : memref<16x128xf32, #tpu.memory_space<vmem>>, vector<16x128xf32>
    %c0_6 = arith.constant 0 : index
    %c0_7 = arith.constant 0 : index
    %6 = vector.load %arg7[%c0_6, %c0_7] : memref<1x128xf32, #tpu.memory_space<vmem>>, vector<1x128xf32>
    %7 = vector.shape_cast %6 : vector<1x128xf32> to vector<1x128xf32>
    %8 = vector.broadcast %7 : vector<1x128xf32> to vector<16x128xf32>
    %c0_8 = arith.constant 0 : index
    %c0_9 = arith.constant 0 : index
    %9 = vector.load %arg8[%c0_8, %c0_9] : memref<1x128xf32, #tpu.memory_space<vmem>>, vector<1x128xf32>
    %10 = vector.shape_cast %9 : vector<1x128xf32> to vector<1x128xf32>
    %11 = vector.broadcast %10 : vector<1x128xf32> to vector<16x128xf32>
    %c0_10 = arith.constant 0 : index
    %c0_11 = arith.constant 0 : index
    %12 = vector.load %arg9[%c0_10, %c0_11] : memref<1x128xf32, #tpu.memory_space<vmem>>, vector<1x128xf32>
    %13 = vector.shape_cast %12 : vector<1x128xf32> to vector<1x128xf32>
    %14 = vector.broadcast %13 : vector<1x128xf32> to vector<16x128xf32>
    %c0_12 = arith.constant 0 : index
    %c0_13 = arith.constant 0 : index
    %15 = vector.load %arg10[%c0_12, %c0_13] : memref<1x128xf32, #tpu.memory_space<vmem>>, vector<1x128xf32>
    %16 = vector.shape_cast %15 : vector<1x128xf32> to vector<1x128xf32>
    %17 = vector.broadcast %16 : vector<1x128xf32> to vector<16x128xf32>
    %c0_14 = arith.constant 0 : index
    %c0_15 = arith.constant 0 : index
    %18 = vector.load %arg11[%c0_14, %c0_15] : memref<1x128xf32, #tpu.memory_space<vmem>>, vector<1x128xf32>
    %19 = vector.shape_cast %18 : vector<1x128xf32> to vector<1x128xf32>
    %20 = vector.broadcast %19 : vector<1x128xf32> to vector<16x128xf32>
    %c0_16 = arith.constant 0 : index
    %c0_17 = arith.constant 0 : index
    %21 = vector.load %arg3[%c0_16, %c0_17] : memref<128x128xbf16, #tpu.memory_space<vmem>>, vector<128x128xbf16>
    %cst = arith.constant 1.000000e+00 : f32
    %22 = vector.broadcast %cst : f32 to vector<16x128xf32>
    %23 = arith.subf %22, %4 : vector<16x128xf32>
    %24 = arith.mulf %8, %23 : vector<16x128xf32>
    %25 = arith.addf %4, %24 : vector<16x128xf32>
    %26 = arith.mulf %5, %4 : vector<16x128xf32>
    %27 = arith.mulf %26, %3 : vector<16x128xf32>
    %28 = arith.mulf %11, %27 : vector<16x128xf32>
    %29 = arith.subf %25, %28 : vector<16x128xf32>
    %30 = arith.addf %5, %14 : vector<16x128xf32>
    %31 = arith.mulf %17, %5 : vector<16x128xf32>
    %32 = arith.subf %30, %31 : vector<16x128xf32>
    %cst_18 = arith.constant 1.000000e+00 : f32
    %33 = vector.broadcast %cst_18 : f32 to vector<16x128xf32>
    %34 = arith.subf %33, %5 : vector<16x128xf32>
    %35 = arith.mulf %34, %3 : vector<16x128xf32>
    %36 = arith.mulf %20, %35 : vector<16x128xf32>
    %37 = arith.addf %32, %36 : vector<16x128xf32>
    %cst_19 = arith.constant 0.000000e+00 : f32
    %38 = vector.broadcast %cst_19 : f32 to vector<16x128xf32>
    %39 = arith.maximumf %29, %38 : vector<16x128xf32>
    %cst_20 = arith.constant 1.000000e+00 : f32
    %40 = vector.broadcast %cst_20 : f32 to vector<16x128xf32>
    %41 = arith.minimumf %40, %39 : vector<16x128xf32>
    %cst_21 = arith.constant 0.000000e+00 : f32
    %42 = vector.broadcast %cst_21 : f32 to vector<16x128xf32>
    %43 = arith.maximumf %37, %42 : vector<16x128xf32>
    %cst_22 = arith.constant 1.000000e+00 : f32
    %44 = vector.broadcast %cst_22 : f32 to vector<16x128xf32>
    %45 = arith.minimumf %44, %43 : vector<16x128xf32>
    %46 = arith.mulf %45, %41 : vector<16x128xf32>
    %47 = arith.mulf %46, %3 : vector<16x128xf32>
    %48 = arith.truncf %47 : vector<16x128xf32> to vector<16x128xbf16>
    %cst_23 = arith.constant dense<0.000000e+00> : vector<16x128xf32>
    %49 = tpu.matmul %48, %21, %cst_23 {dimension_numbers = #tpu.dot_dimension_numbers<[1], [0], [0], [1], [0, 0, 1, 1], [], []>} : vector<16x128xbf16>, vector<128x128xbf16>, vector<16x128xf32> -> vector<16x128xf32>
    %cst_24 = arith.constant 8.000000e-01 : f32
    %50 = vector.broadcast %cst_24 : f32 to vector<16x128xf32>
    %51 = arith.mulf %3, %50 : vector<16x128xf32>
    %c0_25 = arith.constant 0 : index
    %c0_26 = arith.constant 0 : index
    %c0_27 = arith.constant 0 : index
    %52 = vector.load %arg2[%c0_25, %c0_26, %c0_27] : memref<8x16x128xf32, #tpu.memory_space<vmem>>, vector<1x16x128xf32>
    %53 = vector.shape_cast %52 : vector<1x16x128xf32> to vector<16x128xf32>
    %54 = arith.addf %51, %53 : vector<16x128xf32>
    %55 = arith.addf %54, %49 : vector<16x128xf32>
    %cst_28 = arith.constant 0.000000e+00 : f32
    %56 = vector.broadcast %cst_28 : f32 to vector<16x128xf32>
    %57 = arith.maximumf %55, %56 : vector<16x128xf32>
    %c0_29 = arith.constant 0 : index
    %c0_30 = arith.constant 0 : index
    %c0_31 = arith.constant 0 : index
    %58 = vector.load %arg12[%c0_29, %c0_30, %c0_31] : memref<8x16x128xf32, #tpu.memory_space<vmem>>, vector<1x16x128xf32>
    %59 = vector.shape_cast %58 : vector<1x16x128xf32> to vector<16x128xf32>
    %60 = vector.shape_cast %57 : vector<16x128xf32> to vector<1x16x128xf32>
    tpu.vector_store %arg12[%c0_29, %c0_30, %c0_31], %60 {strides = array<i32>} : memref<8x16x128xf32, #tpu.memory_space<vmem>>, vector<1x16x128xf32>,
    %c0_32 = arith.constant 0 : index
    %c0_33 = arith.constant 0 : index
    %c0_34 = arith.constant 0 : index
    %61 = vector.load %arg13[%c0_32, %c0_33, %c0_34] : memref<8x16x128xf32, #tpu.memory_space<vmem>>, vector<1x16x128xf32>
    %62 = vector.shape_cast %61 : vector<1x16x128xf32> to vector<16x128xf32>
    %63 = vector.shape_cast %41 : vector<16x128xf32> to vector<1x16x128xf32>
    tpu.vector_store %arg13[%c0_32, %c0_33, %c0_34], %63 {strides = array<i32>} : memref<8x16x128xf32, #tpu.memory_space<vmem>>, vector<1x16x128xf32>,
    %c0_35 = arith.constant 0 : index
    %c0_36 = arith.constant 0 : index
    %c0_37 = arith.constant 0 : index
    %64 = vector.load %arg14[%c0_35, %c0_36, %c0_37] : memref<8x16x128xf32, #tpu.memory_space<vmem>>, vector<1x16x128xf32>
    %65 = vector.shape_cast %64 : vector<1x16x128xf32> to vector<16x128xf32>
    %66 = vector.shape_cast %45 : vector<16x128xf32> to vector<1x16x128xf32>
    tpu.vector_store %arg14[%c0_35, %c0_36, %c0_37], %66 {strides = array<i32>} : memref<8x16x128xf32, #tpu.memory_space<vmem>>, vector<1x16x128xf32>,
    %cst_38 = arith.constant 1.000000e+00 : f32
    %67 = vector.broadcast %cst_38 : f32 to vector<16x128xf32>
    %68 = arith.subf %67, %41 : vector<16x128xf32>
    %69 = arith.mulf %8, %68 : vector<16x128xf32>
    %70 = arith.addf %41, %69 : vector<16x128xf32>
    %71 = arith.mulf %45, %41 : vector<16x128xf32>
    %72 = arith.mulf %71, %57 : vector<16x128xf32>
    %73 = arith.mulf %11, %72 : vector<16x128xf32>
    %74 = arith.subf %70, %73 : vector<16x128xf32>
    %75 = arith.addf %45, %14 : vector<16x128xf32>
    %76 = arith.mulf %17, %45 : vector<16x128xf32>
    %77 = arith.subf %75, %76 : vector<16x128xf32>
    %cst_39 = arith.constant 1.000000e+00 : f32
    %78 = vector.broadcast %cst_39 : f32 to vector<16x128xf32>
    %79 = arith.subf %78, %45 : vector<16x128xf32>
    %80 = arith.mulf %79, %57 : vector<16x128xf32>
    %81 = arith.mulf %20, %80 : vector<16x128xf32>
    %82 = arith.addf %77, %81 : vector<16x128xf32>
    %cst_40 = arith.constant 0.000000e+00 : f32
    %83 = vector.broadcast %cst_40 : f32 to vector<16x128xf32>
    %84 = arith.maximumf %74, %83 : vector<16x128xf32>
    %cst_41 = arith.constant 1.000000e+00 : f32
    %85 = vector.broadcast %cst_41 : f32 to vector<16x128xf32>
    %86 = arith.minimumf %85, %84 : vector<16x128xf32>
    %cst_42 = arith.constant 0.000000e+00 : f32
    %87 = vector.broadcast %cst_42 : f32 to vector<16x128xf32>
    %88 = arith.maximumf %82, %87 : vector<16x128xf32>
    %cst_43 = arith.constant 1.000000e+00 : f32
    %89 = vector.broadcast %cst_43 : f32 to vector<16x128xf32>
    %90 = arith.minimumf %89, %88 : vector<16x128xf32>
    %91 = arith.mulf %90, %86 : vector<16x128xf32>
    %92 = arith.mulf %91, %57 : vector<16x128xf32>
    %93 = arith.truncf %92 : vector<16x128xf32> to vector<16x128xbf16>
    %cst_44 = arith.constant dense<0.000000e+00> : vector<16x128xf32>
    %94 = tpu.matmul %93, %21, %cst_44 {dimension_numbers = #tpu.dot_dimension_numbers<[1], [0], [0], [1], [0, 0, 1, 1], [], []>} : vector<16x128xbf16>, vector<128x128xbf16>, vector<16x128xf32> -> vector<16x128xf32>
    %cst_45 = arith.constant 8.000000e-01 : f32
    %95 = vector.broadcast %cst_45 : f32 to vector<16x128xf32>
    %96 = arith.mulf %57, %95 : vector<16x128xf32>
    %c1 = arith.constant 1 : index
    %c0_46 = arith.constant 0 : index
    %c0_47 = arith.constant 0 : index
    %97 = vector.load %arg2[%c1, %c0_46, %c0_47] : memref<8x16x128xf32, #tpu.memory_space<vmem>>, vector<1x16x128xf32>
    %98 = vector.shape_cast %97 : vector<1x16x128xf32> to vector<16x128xf32>
    %99 = arith.addf %96, %98 : vector<16x128xf32>
    %100 = arith.addf %99, %94 : vector<16x128xf32>
    %cst_48 = arith.constant 0.000000e+00 : f32
    %101 = vector.broadcast %cst_48 : f32 to vector<16x128xf32>
    %102 = arith.maximumf %100, %101 : vector<16x128xf32>
    %c1_49 = arith.constant 1 : index
    %c0_50 = arith.constant 0 : index
    %c0_51 = arith.constant 0 : index
    %103 = vector.load %arg12[%c1_49, %c0_50, %c0_51] : memref<8x16x128xf32, #tpu.memory_space<vmem>>, vector<1x16x128xf32>
    %104 = vector.shape_cast %103 : vector<1x16x128xf32> to vector<16x128xf32>
    %105 = vector.shape_cast %102 : vector<16x128xf32> to vector<1x16x128xf32>
    tpu.vector_store %arg12[%c1_49, %c0_50, %c0_51], %105 {strides = array<i32>} : memref<8x16x128xf32, #tpu.memory_space<vmem>>, vector<1x16x128xf32>,
    %c1_52 = arith.constant 1 : index
    %c0_53 = arith.constant 0 : index
    %c0_54 = arith.constant 0 : index
    %106 = vector.load %arg13[%c1_52, %c0_53, %c0_54] : memref<8x16x128xf32, #tpu.memory_space<vmem>>, vector<1x16x128xf32>
    %107 = vector.shape_cast %106 : vector<1x16x128xf32> to vector<16x128xf32>
    %108 = vector.shape_cast %86 : vector<16x128xf32> to vector<1x16x128xf32>
    tpu.vector_store %arg13[%c1_52, %c0_53, %c0_54], %108 {strides = array<i32>} : memref<8x16x128xf32, #tpu.memory_space<vmem>>, vector<1x16x128xf32>,
    %c1_55 = arith.constant 1 : index
    %c0_56 = arith.constant 0 : index
    %c0_57 = arith.constant 0 : index
    %109 = vector.load %arg14[%c1_55, %c0_56, %c0_57] : memref<8x16x128xf32, #tpu.memory_space<vmem>>, vector<1x16x128xf32>
    %110 = vector.shape_cast %109 : vector<1x16x128xf32> to vector<16x128xf32>
    %111 = vector.shape_cast %90 : vector<16x128xf32> to vector<1x16x128xf32>
    tpu.vector_store %arg14[%c1_55, %c0_56, %c0_57], %111 {strides = array<i32>} : memref<8x16x128xf32, #tpu.memory_space<vmem>>, vector<1x16x128xf32>,
    %cst_58 = arith.constant 1.000000e+00 : f32
    %112 = vector.broadcast %cst_58 : f32 to vector<16x128xf32>
    %113 = arith.subf %112, %86 : vector<16x128xf32>
    %114 = arith.mulf %8, %113 : vector<16x128xf32>
    %115 = arith.addf %86, %114 : vector<16x128xf32>
    %116 = arith.mulf %90, %86 : vector<16x128xf32>
    %117 = arith.mulf %116, %102 : vector<16x128xf32>
    %118 = arith.mulf %11, %117 : vector<16x128xf32>
    %119 = arith.subf %115, %118 : vector<16x128xf32>
    %120 = arith.addf %90, %14 : vector<16x128xf32>
    %121 = arith.mulf %17, %90 : vector<16x128xf32>
    %122 = arith.subf %120, %121 : vector<16x128xf32>
    %cst_59 = arith.constant 1.000000e+00 : f32
    %123 = vector.broadcast %cst_59 : f32 to vector<16x128xf32>
    %124 = arith.subf %123, %90 : vector<16x128xf32>
    %125 = arith.mulf %124, %102 : vector<16x128xf32>
    %126 = arith.mulf %20, %125 : vector<16x128xf32>
    %127 = arith.addf %122, %126 : vector<16x128xf32>
    %cst_60 = arith.constant 0.000000e+00 : f32
    %128 = vector.broadcast %cst_60 : f32 to vector<16x128xf32>
    %129 = arith.maximumf %119, %128 : vector<16x128xf32>
    %cst_61 = arith.constant 1.000000e+00 : f32
    %130 = vector.broadcast %cst_61 : f32 to vector<16x128xf32>
    %131 = arith.minimumf %130, %129 : vector<16x128xf32>
    %cst_62 = arith.constant 0.000000e+00 : f32
    %132 = vector.broadcast %cst_62 : f32 to vector<16x128xf32>
    %133 = arith.maximumf %127, %132 : vector<16x128xf32>
    %cst_63 = arith.constant 1.000000e+00 : f32
    %134 = vector.broadcast %cst_63 : f32 to vector<16x128xf32>
    %135 = arith.minimumf %134, %133 : vector<16x128xf32>
    %136 = arith.mulf %135, %131 : vector<16x128xf32>
    %137 = arith.mulf %136, %102 : vector<16x128xf32>
    %138 = arith.truncf %137 : vector<16x128xf32> to vector<16x128xbf16>
    %cst_64 = arith.constant dense<0.000000e+00> : vector<16x128xf32>
    %139 = tpu.matmul %138, %21, %cst_64 {dimension_numbers = #tpu.dot_dimension_numbers<[1], [0], [0], [1], [0, 0, 1, 1], [], []>} : vector<16x128xbf16>, vector<128x128xbf16>, vector<16x128xf32> -> vector<16x128xf32>
    %cst_65 = arith.constant 8.000000e-01 : f32
    %140 = vector.broadcast %cst_65 : f32 to vector<16x128xf32>
    %141 = arith.mulf %102, %140 : vector<16x128xf32>
    %c2 = arith.constant 2 : index
    %c0_66 = arith.constant 0 : index
    %c0_67 = arith.constant 0 : index
    %142 = vector.load %arg2[%c2, %c0_66, %c0_67] : memref<8x16x128xf32, #tpu.memory_space<vmem>>, vector<1x16x128xf32>
    %143 = vector.shape_cast %142 : vector<1x16x128xf32> to vector<16x128xf32>
    %144 = arith.addf %141, %143 : vector<16x128xf32>
    %145 = arith.addf %144, %139 : vector<16x128xf32>
    %cst_68 = arith.constant 0.000000e+00 : f32
    %146 = vector.broadcast %cst_68 : f32 to vector<16x128xf32>
    %147 = arith.maximumf %145, %146 : vector<16x128xf32>
    %c2_69 = arith.constant 2 : index
    %c0_70 = arith.constant 0 : index
    %c0_71 = arith.constant 0 : index
    %148 = vector.load %arg12[%c2_69, %c0_70, %c0_71] : memref<8x16x128xf32, #tpu.memory_space<vmem>>, vector<1x16x128xf32>
    %149 = vector.shape_cast %148 : vector<1x16x128xf32> to vector<16x128xf32>
    %150 = vector.shape_cast %147 : vector<16x128xf32> to vector<1x16x128xf32>
    tpu.vector_store %arg12[%c2_69, %c0_70, %c0_71], %150 {strides = array<i32>} : memref<8x16x128xf32, #tpu.memory_space<vmem>>, vector<1x16x128xf32>,
    %c2_72 = arith.constant 2 : index
    %c0_73 = arith.constant 0 : index
    %c0_74 = arith.constant 0 : index
    %151 = vector.load %arg13[%c2_72, %c0_73, %c0_74] : memref<8x16x128xf32, #tpu.memory_space<vmem>>, vector<1x16x128xf32>
    %152 = vector.shape_cast %151 : vector<1x16x128xf32> to vector<16x128xf32>
    %153 = vector.shape_cast %131 : vector<16x128xf32> to vector<1x16x128xf32>
    tpu.vector_store %arg13[%c2_72, %c0_73, %c0_74], %153 {strides = array<i32>} : memref<8x16x128xf32, #tpu.memory_space<vmem>>, vector<1x16x128xf32>,
    %c2_75 = arith.constant 2 : index
    %c0_76 = arith.constant 0 : index
    %c0_77 = arith.constant 0 : index
    %154 = vector.load %arg14[%c2_75, %c0_76, %c0_77] : memref<8x16x128xf32, #tpu.memory_space<vmem>>, vector<1x16x128xf32>
    %155 = vector.shape_cast %154 : vector<1x16x128xf32> to vector<16x128xf32>
    %156 = vector.shape_cast %135 : vector<16x128xf32> to vector<1x16x128xf32>
    tpu.vector_store %arg14[%c2_75, %c0_76, %c0_77], %156 {strides = array<i32>} : memref<8x16x128xf32, #tpu.memory_space<vmem>>, vector<1x16x128xf32>,
    %cst_78 = arith.constant 1.000000e+00 : f32
    %157 = vector.broadcast %cst_78 : f32 to vector<16x128xf32>
    %158 = arith.subf %157, %131 : vector<16x128xf32>
    %159 = arith.mulf %8, %158 : vector<16x128xf32>
    %160 = arith.addf %131, %159 : vector<16x128xf32>
    %161 = arith.mulf %135, %131 : vector<16x128xf32>
    %162 = arith.mulf %161, %147 : vector<16x128xf32>
    %163 = arith.mulf %11, %162 : vector<16x128xf32>
    %164 = arith.subf %160, %163 : vector<16x128xf32>
    %165 = arith.addf %135, %14 : vector<16x128xf32>
    %166 = arith.mulf %17, %135 : vector<16x128xf32>
    %167 = arith.subf %165, %166 : vector<16x128xf32>
    %cst_79 = arith.constant 1.000000e+00 : f32
    %168 = vector.broadcast %cst_79 : f32 to vector<16x128xf32>
    %169 = arith.subf %168, %135 : vector<16x128xf32>
    %170 = arith.mulf %169, %147 : vector<16x128xf32>
    %171 = arith.mulf %20, %170 : vector<16x128xf32>
    %172 = arith.addf %167, %171 : vector<16x128xf32>
    %cst_80 = arith.constant 0.000000e+00 : f32
    %173 = vector.broadcast %cst_80 : f32 to vector<16x128xf32>
    %174 = arith.maximumf %164, %173 : vector<16x128xf32>
    %cst_81 = arith.constant 1.000000e+00 : f32
    %175 = vector.broadcast %cst_81 : f32 to vector<16x128xf32>
    %176 = arith.minimumf %175, %174 : vector<16x128xf32>
    %cst_82 = arith.constant 0.000000e+00 : f32
    %177 = vector.broadcast %cst_82 : f32 to vector<16x128xf32>
    %178 = arith.maximumf %172, %177 : vector<16x128xf32>
    %cst_83 = arith.constant 1.000000e+00 : f32
    %179 = vector.broadcast %cst_83 : f32 to vector<16x128xf32>
    %180 = arith.minimumf %179, %178 : vector<16x128xf32>
    %181 = arith.mulf %180, %176 : vector<16x128xf32>
    %182 = arith.mulf %181, %147 : vector<16x128xf32>
    %183 = arith.truncf %182 : vector<16x128xf32> to vector<16x128xbf16>
    %cst_84 = arith.constant dense<0.000000e+00> : vector<16x128xf32>
    %184 = tpu.matmul %183, %21, %cst_84 {dimension_numbers = #tpu.dot_dimension_numbers<[1], [0], [0], [1], [0, 0, 1, 1], [], []>} : vector<16x128xbf16>, vector<128x128xbf16>, vector<16x128xf32> -> vector<16x128xf32>
    %cst_85 = arith.constant 8.000000e-01 : f32
    %185 = vector.broadcast %cst_85 : f32 to vector<16x128xf32>
    %186 = arith.mulf %147, %185 : vector<16x128xf32>
    %c3 = arith.constant 3 : index
    %c0_86 = arith.constant 0 : index
    %c0_87 = arith.constant 0 : index
    %187 = vector.load %arg2[%c3, %c0_86, %c0_87] : memref<8x16x128xf32, #tpu.memory_space<vmem>>, vector<1x16x128xf32>
    %188 = vector.shape_cast %187 : vector<1x16x128xf32> to vector<16x128xf32>
    %189 = arith.addf %186, %188 : vector<16x128xf32>
    %190 = arith.addf %189, %184 : vector<16x128xf32>
    %cst_88 = arith.constant 0.000000e+00 : f32
    %191 = vector.broadcast %cst_88 : f32 to vector<16x128xf32>
    %192 = arith.maximumf %190, %191 : vector<16x128xf32>
    %c3_89 = arith.constant 3 : index
    %c0_90 = arith.constant 0 : index
    %c0_91 = arith.constant 0 : index
    %193 = vector.load %arg12[%c3_89, %c0_90, %c0_91] : memref<8x16x128xf32, #tpu.memory_space<vmem>>, vector<1x16x128xf32>
    %194 = vector.shape_cast %193 : vector<1x16x128xf32> to vector<16x128xf32>
    %195 = vector.shape_cast %192 : vector<16x128xf32> to vector<1x16x128xf32>
    tpu.vector_store %arg12[%c3_89, %c0_90, %c0_91], %195 {strides = array<i32>} : memref<8x16x128xf32, #tpu.memory_space<vmem>>, vector<1x16x128xf32>,
    %c3_92 = arith.constant 3 : index
    %c0_93 = arith.constant 0 : index
    %c0_94 = arith.constant 0 : index
    %196 = vector.load %arg13[%c3_92, %c0_93, %c0_94] : memref<8x16x128xf32, #tpu.memory_space<vmem>>, vector<1x16x128xf32>
    %197 = vector.shape_cast %196 : vector<1x16x128xf32> to vector<16x128xf32>
    %198 = vector.shape_cast %176 : vector<16x128xf32> to vector<1x16x128xf32>
    tpu.vector_store %arg13[%c3_92, %c0_93, %c0_94], %198 {strides = array<i32>} : memref<8x16x128xf32, #tpu.memory_space<vmem>>, vector<1x16x128xf32>,
    %c3_95 = arith.constant 3 : index
    %c0_96 = arith.constant 0 : index
    %c0_97 = arith.constant 0 : index
    %199 = vector.load %arg14[%c3_95, %c0_96, %c0_97] : memref<8x16x128xf32, #tpu.memory_space<vmem>>, vector<1x16x128xf32>
    %200 = vector.shape_cast %199 : vector<1x16x128xf32> to vector<16x128xf32>
    %201 = vector.shape_cast %180 : vector<16x128xf32> to vector<1x16x128xf32>
    tpu.vector_store %arg14[%c3_95, %c0_96, %c0_97], %201 {strides = array<i32>} : memref<8x16x128xf32, #tpu.memory_space<vmem>>, vector<1x16x128xf32>,
    %cst_98 = arith.constant 1.000000e+00 : f32
    %202 = vector.broadcast %cst_98 : f32 to vector<16x128xf32>
    %203 = arith.subf %202, %176 : vector<16x128xf32>
    %204 = arith.mulf %8, %203 : vector<16x128xf32>
    %205 = arith.addf %176, %204 : vector<16x128xf32>
    %206 = arith.mulf %180, %176 : vector<16x128xf32>
    %207 = arith.mulf %206, %192 : vector<16x128xf32>
    %208 = arith.mulf %11, %207 : vector<16x128xf32>
    %209 = arith.subf %205, %208 : vector<16x128xf32>
    %210 = arith.addf %180, %14 : vector<16x128xf32>
    %211 = arith.mulf %17, %180 : vector<16x128xf32>
    %212 = arith.subf %210, %211 : vector<16x128xf32>
    %cst_99 = arith.constant 1.000000e+00 : f32
    %213 = vector.broadcast %cst_99 : f32 to vector<16x128xf32>
    %214 = arith.subf %213, %180 : vector<16x128xf32>
    %215 = arith.mulf %214, %192 : vector<16x128xf32>
    %216 = arith.mulf %20, %215 : vector<16x128xf32>
    %217 = arith.addf %212, %216 : vector<16x128xf32>
    %cst_100 = arith.constant 0.000000e+00 : f32
    %218 = vector.broadcast %cst_100 : f32 to vector<16x128xf32>
    %219 = arith.maximumf %209, %218 : vector<16x128xf32>
    %cst_101 = arith.constant 1.000000e+00 : f32
    %220 = vector.broadcast %cst_101 : f32 to vector<16x128xf32>
    %221 = arith.minimumf %220, %219 : vector<16x128xf32>
    %cst_102 = arith.constant 0.000000e+00 : f32
    %222 = vector.broadcast %cst_102 : f32 to vector<16x128xf32>
    %223 = arith.maximumf %217, %222 : vector<16x128xf32>
    %cst_103 = arith.constant 1.000000e+00 : f32
    %224 = vector.broadcast %cst_103 : f32 to vector<16x128xf32>
    %225 = arith.minimumf %224, %223 : vector<16x128xf32>
    %226 = arith.mulf %225, %221 : vector<16x128xf32>
    %227 = arith.mulf %226, %192 : vector<16x128xf32>
    %228 = arith.truncf %227 : vector<16x128xf32> to vector<16x128xbf16>
    %cst_104 = arith.constant dense<0.000000e+00> : vector<16x128xf32>
    %229 = tpu.matmul %228, %21, %cst_104 {dimension_numbers = #tpu.dot_dimension_numbers<[1], [0], [0], [1], [0, 0, 1, 1], [], []>} : vector<16x128xbf16>, vector<128x128xbf16>, vector<16x128xf32> -> vector<16x128xf32>
    %cst_105 = arith.constant 8.000000e-01 : f32
    %230 = vector.broadcast %cst_105 : f32 to vector<16x128xf32>
    %231 = arith.mulf %192, %230 : vector<16x128xf32>
    %c4 = arith.constant 4 : index
    %c0_106 = arith.constant 0 : index
    %c0_107 = arith.constant 0 : index
    %232 = vector.load %arg2[%c4, %c0_106, %c0_107] : memref<8x16x128xf32, #tpu.memory_space<vmem>>, vector<1x16x128xf32>
    %233 = vector.shape_cast %232 : vector<1x16x128xf32> to vector<16x128xf32>
    %234 = arith.addf %231, %233 : vector<16x128xf32>
    %235 = arith.addf %234, %229 : vector<16x128xf32>
    %cst_108 = arith.constant 0.000000e+00 : f32
    %236 = vector.broadcast %cst_108 : f32 to vector<16x128xf32>
    %237 = arith.maximumf %235, %236 : vector<16x128xf32>
    %c4_109 = arith.constant 4 : index
    %c0_110 = arith.constant 0 : index
    %c0_111 = arith.constant 0 : index
    %238 = vector.load %arg12[%c4_109, %c0_110, %c0_111] : memref<8x16x128xf32, #tpu.memory_space<vmem>>, vector<1x16x128xf32>
    %239 = vector.shape_cast %238 : vector<1x16x128xf32> to vector<16x128xf32>
    %240 = vector.shape_cast %237 : vector<16x128xf32> to vector<1x16x128xf32>
    tpu.vector_store %arg12[%c4_109, %c0_110, %c0_111], %240 {strides = array<i32>} : memref<8x16x128xf32, #tpu.memory_space<vmem>>, vector<1x16x128xf32>,
    %c4_112 = arith.constant 4 : index
    %c0_113 = arith.constant 0 : index
    %c0_114 = arith.constant 0 : index
    %241 = vector.load %arg13[%c4_112, %c0_113, %c0_114] : memref<8x16x128xf32, #tpu.memory_space<vmem>>, vector<1x16x128xf32>
    %242 = vector.shape_cast %241 : vector<1x16x128xf32> to vector<16x128xf32>
    %243 = vector.shape_cast %221 : vector<16x128xf32> to vector<1x16x128xf32>
    tpu.vector_store %arg13[%c4_112, %c0_113, %c0_114], %243 {strides = array<i32>} : memref<8x16x128xf32, #tpu.memory_space<vmem>>, vector<1x16x128xf32>,
    %c4_115 = arith.constant 4 : index
    %c0_116 = arith.constant 0 : index
    %c0_117 = arith.constant 0 : index
    %244 = vector.load %arg14[%c4_115, %c0_116, %c0_117] : memref<8x16x128xf32, #tpu.memory_space<vmem>>, vector<1x16x128xf32>
    %245 = vector.shape_cast %244 : vector<1x16x128xf32> to vector<16x128xf32>
    %246 = vector.shape_cast %225 : vector<16x128xf32> to vector<1x16x128xf32>
    tpu.vector_store %arg14[%c4_115, %c0_116, %c0_117], %246 {strides = array<i32>} : memref<8x16x128xf32, #tpu.memory_space<vmem>>, vector<1x16x128xf32>,
    %cst_118 = arith.constant 1.000000e+00 : f32
    %247 = vector.broadcast %cst_118 : f32 to vector<16x128xf32>
    %248 = arith.subf %247, %221 : vector<16x128xf32>
    %249 = arith.mulf %8, %248 : vector<16x128xf32>
    %250 = arith.addf %221, %249 : vector<16x128xf32>
    %251 = arith.mulf %225, %221 : vector<16x128xf32>
    %252 = arith.mulf %251, %237 : vector<16x128xf32>
    %253 = arith.mulf %11, %252 : vector<16x128xf32>
    %254 = arith.subf %250, %253 : vector<16x128xf32>
    %255 = arith.addf %225, %14 : vector<16x128xf32>
    %256 = arith.mulf %17, %225 : vector<16x128xf32>
    %257 = arith.subf %255, %256 : vector<16x128xf32>
    %cst_119 = arith.constant 1.000000e+00 : f32
    %258 = vector.broadcast %cst_119 : f32 to vector<16x128xf32>
    %259 = arith.subf %258, %225 : vector<16x128xf32>
    %260 = arith.mulf %259, %237 : vector<16x128xf32>
    %261 = arith.mulf %20, %260 : vector<16x128xf32>
    %262 = arith.addf %257, %261 : vector<16x128xf32>
    %cst_120 = arith.constant 0.000000e+00 : f32
    %263 = vector.broadcast %cst_120 : f32 to vector<16x128xf32>
    %264 = arith.maximumf %254, %263 : vector<16x128xf32>
    %cst_121 = arith.constant 1.000000e+00 : f32
    %265 = vector.broadcast %cst_121 : f32 to vector<16x128xf32>
    %266 = arith.minimumf %265, %264 : vector<16x128xf32>
    %cst_122 = arith.constant 0.000000e+00 : f32
    %267 = vector.broadcast %cst_122 : f32 to vector<16x128xf32>
    %268 = arith.maximumf %262, %267 : vector<16x128xf32>
    %cst_123 = arith.constant 1.000000e+00 : f32
    %269 = vector.broadcast %cst_123 : f32 to vector<16x128xf32>
    %270 = arith.minimumf %269, %268 : vector<16x128xf32>
    %271 = arith.mulf %270, %266 : vector<16x128xf32>
    %272 = arith.mulf %271, %237 : vector<16x128xf32>
    %273 = arith.truncf %272 : vector<16x128xf32> to vector<16x128xbf16>
    %cst_124 = arith.constant dense<0.000000e+00> : vector<16x128xf32>
    %274 = tpu.matmul %273, %21, %cst_124 {dimension_numbers = #tpu.dot_dimension_numbers<[1], [0], [0], [1], [0, 0, 1, 1], [], []>} : vector<16x128xbf16>, vector<128x128xbf16>, vector<16x128xf32> -> vector<16x128xf32>
    %cst_125 = arith.constant 8.000000e-01 : f32
    %275 = vector.broadcast %cst_125 : f32 to vector<16x128xf32>
    %276 = arith.mulf %237, %275 : vector<16x128xf32>
    %c5 = arith.constant 5 : index
    %c0_126 = arith.constant 0 : index
    %c0_127 = arith.constant 0 : index
    %277 = vector.load %arg2[%c5, %c0_126, %c0_127] : memref<8x16x128xf32, #tpu.memory_space<vmem>>, vector<1x16x128xf32>
    %278 = vector.shape_cast %277 : vector<1x16x128xf32> to vector<16x128xf32>
    %279 = arith.addf %276, %278 : vector<16x128xf32>
    %280 = arith.addf %279, %274 : vector<16x128xf32>
    %cst_128 = arith.constant 0.000000e+00 : f32
    %281 = vector.broadcast %cst_128 : f32 to vector<16x128xf32>
    %282 = arith.maximumf %280, %281 : vector<16x128xf32>
    %c5_129 = arith.constant 5 : index
    %c0_130 = arith.constant 0 : index
    %c0_131 = arith.constant 0 : index
    %283 = vector.load %arg12[%c5_129, %c0_130, %c0_131] : memref<8x16x128xf32, #tpu.memory_space<vmem>>, vector<1x16x128xf32>
    %284 = vector.shape_cast %283 : vector<1x16x128xf32> to vector<16x128xf32>
    %285 = vector.shape_cast %282 : vector<16x128xf32> to vector<1x16x128xf32>
    tpu.vector_store %arg12[%c5_129, %c0_130, %c0_131], %285 {strides = array<i32>} : memref<8x16x128xf32, #tpu.memory_space<vmem>>, vector<1x16x128xf32>,
    %c5_132 = arith.constant 5 : index
    %c0_133 = arith.constant 0 : index
    %c0_134 = arith.constant 0 : index
    %286 = vector.load %arg13[%c5_132, %c0_133, %c0_134] : memref<8x16x128xf32, #tpu.memory_space<vmem>>, vector<1x16x128xf32>
    %287 = vector.shape_cast %286 : vector<1x16x128xf32> to vector<16x128xf32>
    %288 = vector.shape_cast %266 : vector<16x128xf32> to vector<1x16x128xf32>
    tpu.vector_store %arg13[%c5_132, %c0_133, %c0_134], %288 {strides = array<i32>} : memref<8x16x128xf32, #tpu.memory_space<vmem>>, vector<1x16x128xf32>,
    %c5_135 = arith.constant 5 : index
    %c0_136 = arith.constant 0 : index
    %c0_137 = arith.constant 0 : index
    %289 = vector.load %arg14[%c5_135, %c0_136, %c0_137] : memref<8x16x128xf32, #tpu.memory_space<vmem>>, vector<1x16x128xf32>
    %290 = vector.shape_cast %289 : vector<1x16x128xf32> to vector<16x128xf32>
    %291 = vector.shape_cast %270 : vector<16x128xf32> to vector<1x16x128xf32>
    tpu.vector_store %arg14[%c5_135, %c0_136, %c0_137], %291 {strides = array<i32>} : memref<8x16x128xf32, #tpu.memory_space<vmem>>, vector<1x16x128xf32>,
    %cst_138 = arith.constant 1.000000e+00 : f32
    %292 = vector.broadcast %cst_138 : f32 to vector<16x128xf32>
    %293 = arith.subf %292, %266 : vector<16x128xf32>
    %294 = arith.mulf %8, %293 : vector<16x128xf32>
    %295 = arith.addf %266, %294 : vector<16x128xf32>
    %296 = arith.mulf %270, %266 : vector<16x128xf32>
    %297 = arith.mulf %296, %282 : vector<16x128xf32>
    %298 = arith.mulf %11, %297 : vector<16x128xf32>
    %299 = arith.subf %295, %298 : vector<16x128xf32>
    %300 = arith.addf %270, %14 : vector<16x128xf32>
    %301 = arith.mulf %17, %270 : vector<16x128xf32>
    %302 = arith.subf %300, %301 : vector<16x128xf32>
    %cst_139 = arith.constant 1.000000e+00 : f32
    %303 = vector.broadcast %cst_139 : f32 to vector<16x128xf32>
    %304 = arith.subf %303, %270 : vector<16x128xf32>
    %305 = arith.mulf %304, %282 : vector<16x128xf32>
    %306 = arith.mulf %20, %305 : vector<16x128xf32>
    %307 = arith.addf %302, %306 : vector<16x128xf32>
    %cst_140 = arith.constant 0.000000e+00 : f32
    %308 = vector.broadcast %cst_140 : f32 to vector<16x128xf32>
    %309 = arith.maximumf %299, %308 : vector<16x128xf32>
    %cst_141 = arith.constant 1.000000e+00 : f32
    %310 = vector.broadcast %cst_141 : f32 to vector<16x128xf32>
    %311 = arith.minimumf %310, %309 : vector<16x128xf32>
    %cst_142 = arith.constant 0.000000e+00 : f32
    %312 = vector.broadcast %cst_142 : f32 to vector<16x128xf32>
    %313 = arith.maximumf %307, %312 : vector<16x128xf32>
    %cst_143 = arith.constant 1.000000e+00 : f32
    %314 = vector.broadcast %cst_143 : f32 to vector<16x128xf32>
    %315 = arith.minimumf %314, %313 : vector<16x128xf32>
    %316 = arith.mulf %315, %311 : vector<16x128xf32>
    %317 = arith.mulf %316, %282 : vector<16x128xf32>
    %318 = arith.truncf %317 : vector<16x128xf32> to vector<16x128xbf16>
    %cst_144 = arith.constant dense<0.000000e+00> : vector<16x128xf32>
    %319 = tpu.matmul %318, %21, %cst_144 {dimension_numbers = #tpu.dot_dimension_numbers<[1], [0], [0], [1], [0, 0, 1, 1], [], []>} : vector<16x128xbf16>, vector<128x128xbf16>, vector<16x128xf32> -> vector<16x128xf32>
    %cst_145 = arith.constant 8.000000e-01 : f32
    %320 = vector.broadcast %cst_145 : f32 to vector<16x128xf32>
    %321 = arith.mulf %282, %320 : vector<16x128xf32>
    %c6 = arith.constant 6 : index
    %c0_146 = arith.constant 0 : index
    %c0_147 = arith.constant 0 : index
    %322 = vector.load %arg2[%c6, %c0_146, %c0_147] : memref<8x16x128xf32, #tpu.memory_space<vmem>>, vector<1x16x128xf32>
    %323 = vector.shape_cast %322 : vector<1x16x128xf32> to vector<16x128xf32>
    %324 = arith.addf %321, %323 : vector<16x128xf32>
    %325 = arith.addf %324, %319 : vector<16x128xf32>
    %cst_148 = arith.constant 0.000000e+00 : f32
    %326 = vector.broadcast %cst_148 : f32 to vector<16x128xf32>
    %327 = arith.maximumf %325, %326 : vector<16x128xf32>
    %c6_149 = arith.constant 6 : index
    %c0_150 = arith.constant 0 : index
    %c0_151 = arith.constant 0 : index
    %328 = vector.load %arg12[%c6_149, %c0_150, %c0_151] : memref<8x16x128xf32, #tpu.memory_space<vmem>>, vector<1x16x128xf32>
    %329 = vector.shape_cast %328 : vector<1x16x128xf32> to vector<16x128xf32>
    %330 = vector.shape_cast %327 : vector<16x128xf32> to vector<1x16x128xf32>
    tpu.vector_store %arg12[%c6_149, %c0_150, %c0_151], %330 {strides = array<i32>} : memref<8x16x128xf32, #tpu.memory_space<vmem>>, vector<1x16x128xf32>,
    %c6_152 = arith.constant 6 : index
    %c0_153 = arith.constant 0 : index
    %c0_154 = arith.constant 0 : index
    %331 = vector.load %arg13[%c6_152, %c0_153, %c0_154] : memref<8x16x128xf32, #tpu.memory_space<vmem>>, vector<1x16x128xf32>
    %332 = vector.shape_cast %331 : vector<1x16x128xf32> to vector<16x128xf32>
    %333 = vector.shape_cast %311 : vector<16x128xf32> to vector<1x16x128xf32>
    tpu.vector_store %arg13[%c6_152, %c0_153, %c0_154], %333 {strides = array<i32>} : memref<8x16x128xf32, #tpu.memory_space<vmem>>, vector<1x16x128xf32>,
    %c6_155 = arith.constant 6 : index
    %c0_156 = arith.constant 0 : index
    %c0_157 = arith.constant 0 : index
    %334 = vector.load %arg14[%c6_155, %c0_156, %c0_157] : memref<8x16x128xf32, #tpu.memory_space<vmem>>, vector<1x16x128xf32>
    %335 = vector.shape_cast %334 : vector<1x16x128xf32> to vector<16x128xf32>
    %336 = vector.shape_cast %315 : vector<16x128xf32> to vector<1x16x128xf32>
    tpu.vector_store %arg14[%c6_155, %c0_156, %c0_157], %336 {strides = array<i32>} : memref<8x16x128xf32, #tpu.memory_space<vmem>>, vector<1x16x128xf32>,
    %cst_158 = arith.constant 1.000000e+00 : f32
    %337 = vector.broadcast %cst_158 : f32 to vector<16x128xf32>
    %338 = arith.subf %337, %311 : vector<16x128xf32>
    %339 = arith.mulf %8, %338 : vector<16x128xf32>
    %340 = arith.addf %311, %339 : vector<16x128xf32>
    %341 = arith.mulf %315, %311 : vector<16x128xf32>
    %342 = arith.mulf %341, %327 : vector<16x128xf32>
    %343 = arith.mulf %11, %342 : vector<16x128xf32>
    %344 = arith.subf %340, %343 : vector<16x128xf32>
    %345 = arith.addf %315, %14 : vector<16x128xf32>
    %346 = arith.mulf %17, %315 : vector<16x128xf32>
    %347 = arith.subf %345, %346 : vector<16x128xf32>
    %cst_159 = arith.constant 1.000000e+00 : f32
    %348 = vector.broadcast %cst_159 : f32 to vector<16x128xf32>
    %349 = arith.subf %348, %315 : vector<16x128xf32>
    %350 = arith.mulf %349, %327 : vector<16x128xf32>
    %351 = arith.mulf %20, %350 : vector<16x128xf32>
    %352 = arith.addf %347, %351 : vector<16x128xf32>
    %cst_160 = arith.constant 0.000000e+00 : f32
    %353 = vector.broadcast %cst_160 : f32 to vector<16x128xf32>
    %354 = arith.maximumf %344, %353 : vector<16x128xf32>
    %cst_161 = arith.constant 1.000000e+00 : f32
    %355 = vector.broadcast %cst_161 : f32 to vector<16x128xf32>
    %356 = arith.minimumf %355, %354 : vector<16x128xf32>
    %cst_162 = arith.constant 0.000000e+00 : f32
    %357 = vector.broadcast %cst_162 : f32 to vector<16x128xf32>
    %358 = arith.maximumf %352, %357 : vector<16x128xf32>
    %cst_163 = arith.constant 1.000000e+00 : f32
    %359 = vector.broadcast %cst_163 : f32 to vector<16x128xf32>
    %360 = arith.minimumf %359, %358 : vector<16x128xf32>
    %361 = arith.mulf %360, %356 : vector<16x128xf32>
    %362 = arith.mulf %361, %327 : vector<16x128xf32>
    %363 = arith.truncf %362 : vector<16x128xf32> to vector<16x128xbf16>
    %cst_164 = arith.constant dense<0.000000e+00> : vector<16x128xf32>
    %364 = tpu.matmul %363, %21, %cst_164 {dimension_numbers = #tpu.dot_dimension_numbers<[1], [0], [0], [1], [0, 0, 1, 1], [], []>} : vector<16x128xbf16>, vector<128x128xbf16>, vector<16x128xf32> -> vector<16x128xf32>
    %cst_165 = arith.constant 8.000000e-01 : f32
    %365 = vector.broadcast %cst_165 : f32 to vector<16x128xf32>
    %366 = arith.mulf %327, %365 : vector<16x128xf32>
    %c7 = arith.constant 7 : index
    %c0_166 = arith.constant 0 : index
    %c0_167 = arith.constant 0 : index
    %367 = vector.load %arg2[%c7, %c0_166, %c0_167] : memref<8x16x128xf32, #tpu.memory_space<vmem>>, vector<1x16x128xf32>
    %368 = vector.shape_cast %367 : vector<1x16x128xf32> to vector<16x128xf32>
    %369 = arith.addf %366, %368 : vector<16x128xf32>
    %370 = arith.addf %369, %364 : vector<16x128xf32>
    %cst_168 = arith.constant 0.000000e+00 : f32
    %371 = vector.broadcast %cst_168 : f32 to vector<16x128xf32>
    %372 = arith.maximumf %370, %371 : vector<16x128xf32>
    %c7_169 = arith.constant 7 : index
    %c0_170 = arith.constant 0 : index
    %c0_171 = arith.constant 0 : index
    %373 = vector.load %arg12[%c7_169, %c0_170, %c0_171] : memref<8x16x128xf32, #tpu.memory_space<vmem>>, vector<1x16x128xf32>
    %374 = vector.shape_cast %373 : vector<1x16x128xf32> to vector<16x128xf32>
    %375 = vector.shape_cast %372 : vector<16x128xf32> to vector<1x16x128xf32>
    tpu.vector_store %arg12[%c7_169, %c0_170, %c0_171], %375 {strides = array<i32>} : memref<8x16x128xf32, #tpu.memory_space<vmem>>, vector<1x16x128xf32>,
    %c7_172 = arith.constant 7 : index
    %c0_173 = arith.constant 0 : index
    %c0_174 = arith.constant 0 : index
    %376 = vector.load %arg13[%c7_172, %c0_173, %c0_174] : memref<8x16x128xf32, #tpu.memory_space<vmem>>, vector<1x16x128xf32>
    %377 = vector.shape_cast %376 : vector<1x16x128xf32> to vector<16x128xf32>
    %378 = vector.shape_cast %356 : vector<16x128xf32> to vector<1x16x128xf32>
    tpu.vector_store %arg13[%c7_172, %c0_173, %c0_174], %378 {strides = array<i32>} : memref<8x16x128xf32, #tpu.memory_space<vmem>>, vector<1x16x128xf32>,
    %c7_175 = arith.constant 7 : index
    %c0_176 = arith.constant 0 : index
    %c0_177 = arith.constant 0 : index
    %379 = vector.load %arg14[%c7_175, %c0_176, %c0_177] : memref<8x16x128xf32, #tpu.memory_space<vmem>>, vector<1x16x128xf32>
    %380 = vector.shape_cast %379 : vector<1x16x128xf32> to vector<16x128xf32>
    %381 = vector.shape_cast %360 : vector<16x128xf32> to vector<1x16x128xf32>
    tpu.vector_store %arg14[%c7_175, %c0_176, %c0_177], %381 {strides = array<i32>} : memref<8x16x128xf32, #tpu.memory_space<vmem>>, vector<1x16x128xf32>,
    %c0_178 = arith.constant 0 : index
    %c0_179 = arith.constant 0 : index
    %382 = vector.load %arg15[%c0_178, %c0_179] : memref<16x128xf32, #tpu.memory_space<vmem>>, vector<16x128xf32>
    tpu.vector_store %arg15[%c0_178, %c0_179], %372 {strides = array<i32>} : memref<16x128xf32, #tpu.memory_space<vmem>>, vector<16x128xf32>,
    %c0_180 = arith.constant 0 : index
    %c0_181 = arith.constant 0 : index
    %383 = vector.load %arg16[%c0_180, %c0_181] : memref<16x128xf32, #tpu.memory_space<vmem>>, vector<16x128xf32>
    tpu.vector_store %arg16[%c0_180, %c0_181], %356 {strides = array<i32>} : memref<16x128xf32, #tpu.memory_space<vmem>>, vector<16x128xf32>,
    %c0_182 = arith.constant 0 : index
    %c0_183 = arith.constant 0 : index
    %384 = vector.load %arg17[%c0_182, %c0_183] : memref<16x128xf32, #tpu.memory_space<vmem>>, vector<16x128xf32>
    tpu.vector_store %arg17[%c0_182, %c0_183], %360 {strides = array<i32>} : memref<16x128xf32, #tpu.memory_space<vmem>>, vector<16x128xf32>,
    return
  }
  func.func @transform_0(%arg0: i32, %arg1: i32) -> (i32, i32, i32) {
    %c0_i32 = arith.constant 0 : i32
    %c0_i32_0 = arith.constant 0 : i32
    return %arg1, %arg0, %c0_i32 : i32, i32, i32
  }
  func.func @transform_1(%arg0: i32, %arg1: i32) -> (i32, i32) {
    %c0_i32 = arith.constant 0 : i32
    %c0_i32_0 = arith.constant 0 : i32
    %c0_i32_1 = arith.constant 0 : i32
    return %c0_i32, %c0_i32_0 : i32, i32
  }
  func.func @transform_2(%arg0: i32, %arg1: i32) -> (i32, i32) {
    %c0_i32 = arith.constant 0 : i32
    %c0_i32_0 = arith.constant 0 : i32
    return %arg0, %c0_i32 : i32, i32
  }
  func.func @transform_3(%arg0: i32, %arg1: i32) -> (i32, i32) {
    %c0_i32 = arith.constant 0 : i32
    %c0_i32_0 = arith.constant 0 : i32
    return %arg0, %c0_i32 : i32, i32
  }
  func.func @transform_4(%arg0: i32, %arg1: i32) -> (i32, i32) {
    %c0_i32 = arith.constant 0 : i32
    %c0_i32_0 = arith.constant 0 : i32
    return %arg0, %c0_i32 : i32, i32
  }
  func.func @transform_5(%arg0: i32, %arg1: i32) -> (i32, i32) {
    %c0_i32 = arith.constant 0 : i32
    %c0_i32_0 = arith.constant 0 : i32
    %c0_i32_1 = arith.constant 0 : i32
    return %c0_i32, %c0_i32_0 : i32, i32
  }
  func.func @transform_6(%arg0: i32, %arg1: i32) -> (i32, i32) {
    %c0_i32 = arith.constant 0 : i32
    %c0_i32_0 = arith.constant 0 : i32
    %c0_i32_1 = arith.constant 0 : i32
    return %c0_i32, %c0_i32_0 : i32, i32
  }
  func.func @transform_7(%arg0: i32, %arg1: i32) -> (i32, i32) {
    %c0_i32 = arith.constant 0 : i32
    %c0_i32_0 = arith.constant 0 : i32
    %c0_i32_1 = arith.constant 0 : i32
    return %c0_i32, %c0_i32_0 : i32, i32
  }
  func.func @transform_8(%arg0: i32, %arg1: i32) -> (i32, i32) {
    %c0_i32 = arith.constant 0 : i32
    %c0_i32_0 = arith.constant 0 : i32
    %c0_i32_1 = arith.constant 0 : i32
    return %c0_i32, %c0_i32_0 : i32, i32
  }
  func.func @transform_9(%arg0: i32, %arg1: i32) -> (i32, i32) {
    %c0_i32 = arith.constant 0 : i32
    %c0_i32_0 = arith.constant 0 : i32
    %c0_i32_1 = arith.constant 0 : i32
    return %c0_i32, %c0_i32_0 : i32, i32
  }
  func.func @transform_10(%arg0: i32, %arg1: i32) -> (i32, i32, i32) {
    %c0_i32 = arith.constant 0 : i32
    %c0_i32_0 = arith.constant 0 : i32
    return %arg1, %arg0, %c0_i32 : i32, i32, i32
  }
  func.func @transform_11(%arg0: i32, %arg1: i32) -> (i32, i32, i32) {
    %c0_i32 = arith.constant 0 : i32
    %c0_i32_0 = arith.constant 0 : i32
    return %arg1, %arg0, %c0_i32 : i32, i32, i32
  }
  func.func @transform_12(%arg0: i32, %arg1: i32) -> (i32, i32, i32) {
    %c0_i32 = arith.constant 0 : i32
    %c0_i32_0 = arith.constant 0 : i32
    return %arg1, %arg0, %c0_i32 : i32, i32, i32
  }
}

</mosaic_0001>

<bundles_post_ra>
// kernel: run_rnn.1
= control target key start
LH: loop header
LB: loop body
LE: loop exit
PB: predicated region body
PF: predicated region fallthrough
CT: control target
= control target key end

     0   :  { %s3104_s0 = inlined_call_operand.vmem [shape: f32[8,32,128], index: 0, kind: input, shape index: {}]   ;;  %s3105_s1 = inlined_call_operand.vmem [shape: bf16[128,128], index: 1, kind: input, shape index: {}]   ;;  %s3106_s2 = inlined_call_operand.vmem [shape: f32[32,128], index: 2, kind: input, shape index: {}]   ;;  %s3107_s3 = inlined_call_operand.vmem [shape: f32[32,128], index: 3, kind: input, shape index: {}]   ;;  %s3108_s4 = inlined_call_operand.vmem [shape: f32[32,128], index: 4, kind: input, shape index: {}]   ;;  %s3109_s5 = inlined_call_operand.vmem [shape: f32[1,128], index: 5, kind: input, shape index: {}]   ;;  %s3110_s6 = inlined_call_operand.vmem [shape: f32[1,128], index: 6, kind: input, shape index: {}]   ;;  %s3111_s7 = inlined_call_operand.vmem [shape: f32[1,128], index: 7, kind: input, shape index: {}]   ;;  %s3112_s8 = inlined_call_operand.vmem [shape: f32[1,128], index: 8, kind: input, shape index: {}]   ;;  %s3113_s9 = inlined_call_operand.vmem [shape: f32[1,128], index: 9, kind: input, shape index: {}]   ;;  %s3114_s10 = inlined_call_operand.vmem [shape: f32[8,32,128], index: 10, kind: output, shape index: {0}]   ;;  %s3115_s11 = inlined_call_operand.hbm [shape: f32[8,32,128], index: 11, kind: output, shape index: {1}]   ;;  %s3116_s12 = inlined_call_operand.hbm [shape: f32[8,32,128], index: 12, kind: output, shape index: {2}]  }
   0x1   :  { %3121 = sst [smem:[#allocation22_spill]] %s3104_s0 }
   0x2   :  { %18 = vsyncpa [#allocation8], 0 }
   0x3   :  { %20 = vsyncpa [#allocation8 + $0x1], 0 }
   0x4   :  { %21 = vsyncpa [#allocation10], 0 }
   0x5   :  { %23 = vsyncpa [#allocation10 + $0x1], 0  ;;  %s2508_s21 = smov 0   ;;  %s2510_s22 = smov 0  }
   0x6   :  { %s2512_s23 = smov 0   ;;  %s2514_s24 = smov 0  }
   0x7   :  { %s2516_s25 = smov 0   ;;  %s2518_s26 = smov 0  }
   0x8 LB: > { %3122 = sst [smem:[#allocation17_spill]] %s2409_s22  ;;  %s1935_s27 = sadd.s32 4294967295, %s2425_s26   ;;  %s2425_s26 = sphi %s2518_s26, %s29_s26   ;;  %s2421_s25 = sphi %s2516_s25, %s3134_s25   ;;  %s2417_s24 = sphi %s2514_s24, %s3133_s24   ;;  %s2413_s23 = sphi %s2512_s23, %s3132_s23   ;;  %s2409_s22 = sphi %s2510_s22, %s3131_s22   ;;  %s2405_s21 = sphi %s2508_s21, %s3130_s21  }
   0x9   : > { %3123 = sst [smem:[#allocation18_spill]] %s2413_s23  ;;  %s1936_s28 = sadd.s32 4294967294, %s2425_s26  }
   0xa   : > { %3124 = sst [smem:[#allocation19_spill]] %s2421_s25  ;;  %s41_s29 = sadd.s32 1, %s2421_s25 }
   0xb   : > { %s50_s30 = sadd.s32 1, %s2413_s23  ;;  %p43_p0 = scmp.ge.s32.totalorder %s41_s29, 2 }
   0xc   : > { %p57_p1 = scmp.ne.s32.totalorder %s2413_s23, %s2409_s22  ;;  %p58_p2 = scmp.eq.s32.totalorder %s2425_s26, 0 }
   0xd   : > { %p293_p3 = scmp.eq.s32.totalorder %s1935_s27, 1  ;;  %s3136_s29 = smov (%p43_p0, %s41_s29), 0 }
   0xe   : > { %3125 = sst [smem:[#allocation20_spill]] %s3136_s29  ;;  %p59_p4 = por %p58_p2, %p57_p1 }
   0xf   : > { %p2547_p5 = por %p293_p3, %p57_p1  ;;  %s46_s14 = ssub.s32 %s2421_s25, %s3136_s29 }
  0x10   : > { %p326_p6 = scmp.ne.s32.totalorder %s2409_s22, %s2405_s21  ;;  %p48_p7 = scmp.eq.s32.totalorder %s46_s14, 0 }
  0x11   : > { %p327_p8 = scmp.eq.s32.totalorder %s1936_s28, 1  ;;  %p1938_p10 = scmp.ge.s32.totalorder %s2425_s26, 2 }
  0x12   : > { %s2556_s15 = scalar_select %p48_p7, %s2413_s23, %s50_s30  }
  0x13   : > { %p2558_p9 = por %p327_p8, %p326_p6  ;;  %389 = sbr.rel (%p1938_p10) target bundleno = 44 (0x2c), region = 40 }
  0x14   : > { %3127 = sst [smem:[#allocation21_spill]] %s2556_s15 }
  0x1a   : > { %392 = sbr.rel (!%p59_p4) target bundleno = 44 (0x2c), region = 44  ;;  %s394_s17 = sand.u32 (%p59_p4), 1, %s2413_s23  }
  0x1b   : > { %s2033_s18 = sshll.u32 (%p59_p4), %s2421_s25, 4  ;;  %s1939_s19 = sshll.u32 (%p59_p4), %s394_s17, 7 }
  0x1c   : > { %s3129_s0 = sld [smem:[#allocation22_spill]] (%p59_p4)  ;;  %s396_s30 = scalar_lea.vmem (%p59_p4), [#allocation5], %s1939_s19 }
  0x22   : > { %s2570_s28 = scalar_lea.vmem %s3129_s0, %s2033_s18 }
  0x23   : > { %v460_v0 = vld [vmem:[%s2570_s28] sm:$0xff]  ;;  %v462_v1 = vld [vmem:[%s2570_s28 + $0x8] sm:$0xff] }
  0x24   : > { %v464_v2 = vld [vmem:[%s2570_s28 + $0x20] sm:$0xff]  ;;  %461 = vst [vmem:[%s396_s30] sm:$0xff] %v460_v0  ;;  %463 = vst [vmem:[%s396_s30 + $0x8] sm:$0xff] %v462_v1  ;;  %v466_v3 = vld [vmem:[%s2570_s28 + $0x28] sm:$0xff] }
  0x25   : > { %465 = vst [vmem:[%s396_s30 + $0x10] sm:$0xff] %v464_v2  ;;  %v468_v4 = vld [vmem:[%s2570_s28 + $0x40] sm:$0xff]  ;;  %v470_v5 = vld [vmem:[%s2570_s28 + $0x48] sm:$0xff]  ;;  %467 = vst [vmem:[%s396_s30 + $0x18] sm:$0xff] %v466_v3 }
  0x26   : > { %469 = vst [vmem:[%s396_s30 + $0x20] sm:$0xff] %v468_v4  ;;  %471 = vst [vmem:[%s396_s30 + $0x28] sm:$0xff] %v470_v5  ;;  %v472_v6 = vld [vmem:[%s2570_s28 + $0x60] sm:$0xff]  ;;  %v474_v7 = vld [vmem:[%s2570_s28 + $0x68] sm:$0xff] }
  0x27   : > { %v476_v8 = vld [vmem:[%s2570_s28 + $0x80] sm:$0xff]  ;;  %473 = vst [vmem:[%s396_s30 + $0x30] sm:$0xff] %v472_v6  ;;  %475 = vst [vmem:[%s396_s30 + $0x38] sm:$0xff] %v474_v7  ;;  %v478_v9 = vld [vmem:[%s2570_s28 + $0x88] sm:$0xff] }
  0x28   : > { %477 = vst [vmem:[%s396_s30 + $0x40] sm:$0xff] %v476_v8  ;;  %v480_v10 = vld [vmem:[%s2570_s28 + $0xa0] sm:$0xff]  ;;  %v482_v11 = vld [vmem:[%s2570_s28 + $0xa8] sm:$0xff]  ;;  %479 = vst [vmem:[%s396_s30 + $0x48] sm:$0xff] %v478_v9 }
  0x29   : > { %481 = vst [vmem:[%s396_s30 + $0x50] sm:$0xff] %v480_v10  ;;  %483 = vst [vmem:[%s396_s30 + $0x58] sm:$0xff] %v482_v11  ;;  %v484_v12 = vld [vmem:[%s2570_s28 + $0xc0] sm:$0xff]  ;;  %v486_v13 = vld [vmem:[%s2570_s28 + $0xc8] sm:$0xff] }
  0x2a   : > { %v488_v14 = vld [vmem:[%s2570_s28 + $0xe0] sm:$0xff]  ;;  %485 = vst [vmem:[%s396_s30 + $0x60] sm:$0xff] %v484_v12  ;;  %487 = vst [vmem:[%s396_s30 + $0x68] sm:$0xff] %v486_v13  ;;  %v490_v15 = vld [vmem:[%s2570_s28 + $0xe8] sm:$0xff] }
  0x2b   : > { %489 = vst [vmem:[%s396_s30 + $0x70] sm:$0xff] %v488_v14  ;;  %491 = vst [vmem:[%s396_s30 + $0x78] sm:$0xff] %v490_v15 }
  0x2c PF: > { %p1942_p11 = scmp.ge.s32.totalorder %s2425_s26, 1  ;;  %p523_p12 = scmp.lt.s32.totalorder %s2425_s26, 3 }
  0x2e   : > { %p524_p13 = pnand %p1942_p11, %p523_p12 }
  0x2f   : > { %v2593_v16 = vld [vmem:[%s3105_s1] sm:$0xff] (!%p524_p13)   ;;  %v2427_v17 = vmov (!%p524_p13), 0.0   ;;  %v2601_v18 = vld [vmem:[%s3105_s1 + $0x8] sm:$0xff] (!%p524_p13)   ;;  %vm2428_vm0 = vmmov (!%p524_p13), 0   ;;  %v2614_v19 = vld [vmem:[%s3105_s1 + $0x10] sm:$0xff] (!%p524_p13)   ;;  %s1947_s28 = sshll.u32 (!%p524_p13), %s2417_s24, 1 }
  0x30   : > { %527 = sbr.rel (%p524_p13) target bundleno = 1964 (0x7ac), region = 94  ;;  %2109 = vmatprep.subr.bf16.mxu0 (!%p524_p13), %v2427_v17  ;;  %2129 = vmatprep.subr.bf16.mxu1 (!%p524_p13), %v2427_v17  ;;  %p598_p0 = scmp.lt.s32.totalorder (!%p524_p13), %s1947_s28, 3  ;;  %v2627_v20 = vld [vmem:[%s3105_s1 + $0x18] sm:$0xff] (!%p524_p13)   ;;  %v2634_v21 = vld [vmem:[%s3105_s1 + $0x20] sm:$0xff] (!%p524_p13)   ;;  %v2686_v45 = vld [vmem:[%s3105_s1 + $0x28] sm:$0xff] (!%p524_p13)  }
  0x31   : > { %2110 = vmatpush3.bf16.msra.mxu0 (!%p524_p13), %v2593_v16  ;;  %2125 = vmatprep.mubr.msk.bf16.mxu0 (!%p524_p13), %vm2428_vm0, %v2427_v17  ;;  %s2620_s30 = sand.u32 (!%p524_p13), 1, %s2409_s22   ;;  %v2645_v22 = vld [vmem:[%s3109_s5] ss:$0 sm:$0xff] (!%p524_p13)  ;;  %v2705_v59 = vld [vmem:[%s3105_s1 + $0x30] sm:$0xff] (!%p524_p13)   ;;  %v2722_v4 = vld [vmem:[%s3105_s1 + $0x38] sm:$0xff] (!%p524_p13)  }
  0x32   : > { %2111 = vmatprep.subr.bf16.mxu0 (!%p524_p13), %v2427_v17  ;;  %2130 = vmatpush3.bf16.msra.mxu1 (!%p524_p13), %v2593_v16  ;;  %v2650_v23 = vld [vmem:[%s3111_s7] ss:$0 sm:$0xff] (!%p524_p13)  ;;  %s2711_s19 = sshll.u32 (!%p524_p13), %s2620_s30, 7  ;;  %s1557_s17 = scalar_lea.sflag (!%p524_p13), [#allocation10], %s2620_s30 }
  0x33   : > { %2131 = vmatprep.subr.bf16.mxu1 (!%p524_p13), %v2427_v17  ;;  %2145 = vmatprep.mubr.msk.bf16.mxu1 (!%p524_p13), %vm2428_vm0, %v2427_v17  ;;  %v2655_v24 = vld [vmem:[%s3112_s8] ss:$0 sm:$0xff] (!%p524_p13)  ;;  %s2728_s25 = scalar_lea.vmem (!%p524_p13), [#allocation7], %s2711_s19  ;;  %s2775_s22 = scalar_lea.vmem (!%p524_p13), [#allocation5], %s2711_s19 }
  0x34   : > { %v2672_v36 = vld [vmem:[%s3110_s6] ss:$0 sm:$0xff] (!%p524_p13)  ;;  %s2795_s23 = scalar_lea.vmem (!%p524_p13), [#allocation6], %s2711_s19 }
  0x35   : > { %2112 = vmatpush3.bf16.msra.mxu0 (!%p524_p13), %v2601_v18  ;;  %v2691_v46 = vld [vmem:[%s3113_s9] ss:$0 sm:$0xff] (!%p524_p13) }
  0x36   : > { %2113 = vmatprep.subr.bf16.mxu0 (!%p524_p13), %v2427_v17  ;;  %2132 = vmatpush3.bf16.msra.mxu1 (!%p524_p13), %v2601_v18  ;;  %v827_v14 = vld [vmem:[%s2775_s22] sm:$0xff] (!%p524_p13) }
  0x37   : > { %2133 = vmatprep.subr.bf16.mxu1 %v2427_v17  ;;  %s3138_s28 = smov (!%p598_p0, %s1947_s28), 3 }
  0x38   : > { %s1948_s18 = sshll.u32 %s3138_s28, 3 }
  0x39   : > { %2114 = vmatpush3.bf16.msra.mxu0 %v2614_v19  ;;  %s601_s29 = scalar_lea.vmem %s3106_s2, %s1948_s18  ;;  %s607_s14 = scalar_lea.vmem %s3107_s3, %s1948_s18 }
  0x3a   : > { %2115 = vmatprep.subr.bf16.mxu0 %v2427_v17  ;;  %2134 = vmatpush3.bf16.msra.mxu1 %v2614_v19  ;;  %s613_s15 = scalar_lea.vmem %s3108_s4, %s1948_s18  ;;  %v2661_v25 = vld [vmem:[%s601_s29] sm:$0xff]  ;;  %v2663_v26 = vld [vmem:[%s601_s29 + $0x8] sm:$0xff] }
  0x3b   : > { %2135 = vmatprep.subr.bf16.mxu1 %v2427_v17  ;;  %v630_v27 = vld [vmem:[%s607_s14] sm:$0xff]  ;;  %v631_v28 = vld [vmem:[%s607_s14 + $0x8] sm:$0xff]  ;;  %v825_v13 = vmul.f32 0.8, %v2661_v25  ;;  %v826_v15 = vmul.f32 0.8, %v2663_v26 }
  0x3c   : > { %v634_v29 = vld [vmem:[%s613_s15] sm:$0xff]  ;;  %v635_v30 = vld [vmem:[%s613_s15 + $0x8] sm:$0xff]  ;;  %v695_v31 = vsub.f32 1.0, %v630_v27  ;;  %v696_v32 = vsub.f32 1.0, %v631_v28  ;;  %s2740_s15 = scalar_lea.vmem [#allocation9], %s2711_s19  ;;  %s1552_s14 = scalar_lea.sflag [#allocation8], %s2620_s30 }
  0x3d   : > { %2116 = vmatpush3.bf16.msra.mxu0 %v2627_v20  ;;  %v701_v33 = vmul.f32 %v634_v29, %v630_v27  ;;  %v702_v34 = vmul.f32 %v635_v30, %v631_v28  ;;  %v709_v35 = vadd.f32 %v2650_v23, %v634_v29  ;;  %v710_v38 = vadd.f32 %v2650_v23, %v635_v30 }
  0x3e   : > { %2117 = vmatprep.subr.bf16.mxu0 %v2427_v17  ;;  %2136 = vmatpush3.bf16.msra.mxu1 %v2627_v20  ;;  %v697_v37 = vmul.f32 %v2645_v22, %v695_v31  ;;  %v711_v39 = vmul.f32 %v2655_v24, %v634_v29  ;;  %v712_v40 = vmul.f32 %v2655_v24, %v635_v30  ;;  %v715_v44 = vsub.f32 1.0, %v634_v29 }
  0x3f   : > { %2137 = vmatprep.subr.bf16.mxu1 %v2427_v17  ;;  %v698_v41 = vmul.f32 %v2645_v22, %v696_v32  ;;  %v703_v42 = vmul.f32 %v701_v33, %v2661_v25  ;;  %v704_v43 = vmul.f32 %v702_v34, %v2663_v26  ;;  %v716_v49 = vsub.f32 1.0, %v635_v30 }
  0x40   : > { %v699_v47 = vadd.f32 %v697_v37, %v630_v27  ;;  %v713_v48 = vsub.f32 %v709_v35, %v711_v39  ;;  %v717_v53 = vmul.f32 %v715_v44, %v2661_v25  ;;  %v714_v54 = vsub.f32 %v710_v38, %v712_v40  ;;  %v828_v27 = vld [vmem:[%s2775_s22 + $0x8] sm:$0xff] }
  0x41   : > { %2118 = vmatpush3.bf16.msra.mxu0 %v2634_v21  ;;  %v700_v50 = vadd.f32 %v698_v41, %v631_v28  ;;  %v705_v51 = vmul.f32 %v2672_v36, %v703_v42  ;;  %v706_v52 = vmul.f32 %v2672_v36, %v704_v43  ;;  %v718_v55 = vmul.f32 %v716_v49, %v2663_v26 }
  0x42   : > { %2119 = vmatprep.subr.bf16.mxu0 %v2427_v17  ;;  %2138 = vmatpush3.bf16.msra.mxu1 %v2634_v21  ;;  %v719_v58 = vmul.f32 %v2691_v46, %v717_v53  ;;  %v829_v28 = vadd.f32 %v827_v14, %v825_v13  ;;  %v830_v31 = vadd.f32 %v828_v27, %v826_v15 }
  0x43   : > { %v707_v56 = vsub.f32 %v699_v47, %v705_v51  ;;  %v708_v57 = vsub.f32 %v700_v50, %v706_v52  ;;  %2139 = vmatprep.subr.bf16.mxu1 %v2427_v17  ;;  %v720_v60 = vmul.f32 %v2691_v46, %v718_v55 }
  0x44   : > { %v721_v61 = vadd.f32 %v719_v58, %v713_v48 }
  0x45   : > { %2120 = vmatpush3.bf16.msra.mxu0 %v2686_v45  ;;  %v723_v62 = vmax.f32 %v707_v56, 0.0  ;;  %v724_v63 = vmax.f32 %v708_v57, 0.0  ;;  %v722_v0 = vadd.f32 %v720_v60, %v714_v54 }
  0x46   : > { %2121 = vmatprep.subr.bf16.mxu0 %v2427_v17  ;;  %2140 = vmatpush3.bf16.msra.mxu1 %v2686_v45  ;;  %v727_v3 = vmax.f32 %v721_v61, 0.0 }
  0x47   : > { %v2713_v1 = vmin.f32 %v723_v62, 1.0  ;;  %v2715_v2 = vmin.f32 %v724_v63, 1.0  ;;  %2141 = vmatprep.subr.bf16.mxu1 %v2427_v17  ;;  %v728_v5 = vmax.f32 %v722_v0, 0.0 }
  0x48   : > { %v2725_v6 = vmin.f32 %v727_v3, 1.0 }
  0x49   : > { %2122 = vmatpush3.bf16.msra.mxu0 %v2705_v59  ;;  %837 = vst [vmem:[%s2728_s25] sm:$0xff] %v2713_v1  ;;  %838 = vst [vmem:[%s2728_s25 + $0x8] sm:$0xff] %v2715_v2  ;;  %v2734_v7 = vmin.f32 %v728_v5, 1.0  ;;  %v841_v29 = vsub.f32 1.0, %v2713_v1  ;;  %v842_v30 = vsub.f32 1.0, %v2715_v2 }
  0x4a   : > { %2123 = vmatprep.subr.bf16.mxu0 %v2427_v17  ;;  %2142 = vmatpush3.bf16.msra.mxu1 %v2705_v59  ;;  %v731_v8 = vmul.f32 %v2725_v6, %v2713_v1  ;;  %839 = vst [vmem:[%s2740_s15] sm:$0xff] %v2725_v6  ;;  %v853_v33 = vadd.f32 %v2650_v23, %v2725_v6  ;;  %v859_v35 = vsub.f32 1.0, %v2725_v6 }
  0x4b   : > { %2143 = vmatprep.subr.bf16.mxu1 %v2427_v17  ;;  %v732_v9 = vmul.f32 %v2734_v7, %v2715_v2  ;;  %840 = vst [vmem:[%s2740_s15 + $0x8] sm:$0xff] %v2734_v7  ;;  %v854_v39 = vadd.f32 %v2650_v23, %v2734_v7  ;;  %v856_v40 = vmul.f32 %v2655_v24, %v2734_v7  ;;  %v860_v44 = vsub.f32 1.0, %v2734_v7 }
  0x4c   : > { %v733_v10 = vmul.f32 %v731_v8, %v2661_v25  ;;  %v855_v25 = vmul.f32 %v2655_v24, %v2725_v6  ;;  %v844_v41 = vmul.f32 %v2645_v22, %v842_v30 }
  0x4d   : > { %2124 = vmatpush3.bf16.msra.mxu0 %v2722_v4  ;;  %v734_v11 = vmul.f32 %v732_v9, %v2663_v26  ;;  %v843_v26 = vmul.f32 %v2645_v22, %v841_v29  ;;  %v858_v53 = vsub.f32 %v854_v39, %v856_v40 }
  0x4e   : > { %2149 = vmatprep.subr.bf16.mxu0 %v2427_v17  ;;  %2144 = vmatpush3.bf16.msra.mxu1 %v2722_v4  ;;  %v857_v48 = vsub.f32 %v853_v33, %v855_v25  ;;  %v846_v54 = vadd.f32 %v844_v41, %v2715_v2 }
  0x4f   : > { %2169 = vmatprep.subr.bf16.mxu1 %v2427_v17  ;;  %v735_v12 = vpack.c.bf16 %v734_v11, %v733_v10  ;;  %v845_v52 = vadd.f32 %v843_v26, %v2713_v1 }
  0x51   : > { %2126 = vmatmul.mubr.bf16.vlgmr.msra.gmra.mrb[0].mxu0 %v735_v12 }
  0x52   : > { %2150 = vmatpush3.bf16.msra.mxu0 %v2593_v16  ;;  %2165 = vmatprep.mubr.msk.bf16.mxu0 %vm2428_vm0, %v2427_v17 }
  0x53   : > { %2151 = vmatprep.subr.bf16.mxu0 %v2427_v17 }
  0x56   : > { %2152 = vmatpush3.bf16.msra.mxu0 %v2601_v18 }
  0x57   : > { %2153 = vmatprep.subr.bf16.mxu0 %v2427_v17 }
  0x5a   : > { %2154 = vmatpush3.bf16.msra.mxu0 %v2614_v19 }
  0x5b   : > { %2155 = vmatprep.subr.bf16.mxu0 %v2427_v17 }
  0x5e   : > { %2156 = vmatpush3.bf16.msra.mxu0 %v2627_v20 }
  0x5f   : > { %2157 = vmatprep.subr.bf16.mxu0 %v2427_v17 }
  0x62   : > { %2158 = vmatpush3.bf16.msra.mxu0 %v2634_v21 }
  0x63   : > { %2159 = vmatprep.subr.bf16.mxu0 %v2427_v17 }
  0x66   : > { %2160 = vmatpush3.bf16.msra.mxu0 %v2686_v45 }
  0x67   : > { %2161 = vmatprep.subr.bf16.mxu0 %v2427_v17 }
  0x6a   : > { %2162 = vmatpush3.bf16.msra.mxu0 %v2705_v59 }
  0x6b   : > { %2163 = vmatprep.subr.bf16.mxu0 %v2427_v17 }
  0x6e   : > { %2164 = vmatpush3.bf16.msra.mxu0 %v2722_v4 }
  0x6f   : > { %2189 = vmatprep.subr.bf16.mxu0 %v2427_v17 }
 0x124   : > { %v818_v32 = vpop.f32.mrb[0].mxu0 }
 0x125   : > { %v831_v34 = vadd.f32 %v829_v28, %v818_v32  ;;  %v2127_v37 = vpop.f32.mrb[1].mxu0  ;;  %v1966_v28 = vld [vmem:[%s2775_s22 + $0x10] sm:$0xff] }
 0x126   : > { %v821_v38 = vpop.f32.mrb[2].mxu0 }
 0x127   : > { %v833_v42 = vmax.f32 %v831_v34, 0.0  ;;  %v832_v43 = vadd.f32 %v830_v31, %v821_v38  ;;  %v2128_v47 = vpop.f32.mrb[3].mxu0  ;;  %v1967_v31 = vld [vmem:[%s2775_s22 + $0x18] sm:$0xff] }
 0x129   : > { %835 = vst [vmem:[%s2795_s23] sm:$0xff] %v833_v42  ;;  %v847_v49 = vmul.f32 %v833_v42, %v731_v8  ;;  %v861_v50 = vmul.f32 %v859_v35, %v833_v42  ;;  %v834_v51 = vmax.f32 %v832_v43, 0.0  ;;  %v921_v27 = vmul.f32 0.8, %v833_v42 }
 0x12b   : > { %v849_v55 = vmul.f32 %v2672_v36, %v847_v49  ;;  %v863_v56 = vmul.f32 %v2691_v46, %v861_v50  ;;  %836 = vst [vmem:[%s2795_s23 + $0x8] sm:$0xff] %v834_v51  ;;  %v848_v57 = vmul.f32 %v834_v51, %v732_v9  ;;  %v862_v58 = vmul.f32 %v860_v44, %v834_v51 }
 0x12c   : > { %v922_v29 = vmul.f32 0.8, %v834_v51  ;;  %v926_v32 = vadd.f32 %v1966_v28, %v921_v27 }
 0x12d   : > { %v865_v60 = vadd.f32 %v863_v56, %v857_v48  ;;  %v850_v61 = vmul.f32 %v2672_v36, %v848_v57  ;;  %v864_v62 = vmul.f32 %v2691_v46, %v862_v58  ;;  %v851_v63 = vsub.f32 %v845_v52, %v849_v55 }
 0x12e   : > { %v927_v37 = vadd.f32 %v1967_v31, %v922_v29  ;;  %v1974_v31 = vld [vmem:[%s2775_s22 + $0x20] sm:$0xff] }
 0x12f   : > { %v871_v0 = vmax.f32 %v865_v60, 0.0  ;;  %v866_v1 = vadd.f32 %v864_v62, %v858_v53  ;;  %v852_v2 = vsub.f32 %v846_v54, %v850_v61  ;;  %v867_v3 = vmax.f32 %v851_v63, 0.0 }
 0x131   : > { %v873_v5 = vmin.f32 %v871_v0, 1.0  ;;  %v872_v6 = vmax.f32 %v866_v1, 0.0  ;;  %v868_v7 = vmax.f32 %v852_v2, 0.0  ;;  %v869_v8 = vmin.f32 %v867_v3, 1.0 }
 0x133   : > { %1972 = vst [vmem:[%s2740_s15 + $0x10] sm:$0xff] %v873_v5  ;;  %v874_v9 = vmin.f32 %v872_v6, 1.0  ;;  %v870_v10 = vmin.f32 %v868_v7, 1.0  ;;  %v875_v11 = vmul.f32 %v873_v5, %v869_v8  ;;  %1970 = vst [vmem:[%s2728_s25 + $0x10] sm:$0xff] %v869_v8  ;;  %v941_v30 = vsub.f32 1.0, %v869_v8 }
 0x134   : > { %v953_v38 = vadd.f32 %v2650_v23, %v873_v5  ;;  %v955_v39 = vmul.f32 %v2655_v24, %v873_v5 }
 0x135   : > { %1973 = vst [vmem:[%s2740_s15 + $0x18] sm:$0xff] %v874_v9  ;;  %v876_v12 = vmul.f32 %v874_v9, %v870_v10  ;;  %1971 = vst [vmem:[%s2728_s25 + $0x18] sm:$0xff] %v870_v10  ;;  %v877_v13 = vmul.f32 %v875_v11, %v833_v42  ;;  %v942_v25 = vsub.f32 1.0, %v870_v10  ;;  %v943_v26 = vmul.f32 %v2645_v22, %v941_v30 }
 0x136   : > { %v959_v42 = vsub.f32 1.0, %v873_v5  ;;  %v954_v48 = vadd.f32 %v2650_v23, %v874_v9  ;;  %v956_v49 = vmul.f32 %v2655_v24, %v874_v9  ;;  %v960_v53 = vsub.f32 1.0, %v874_v9 }
 0x137   : > { %v878_v14 = vmul.f32 %v876_v12, %v834_v51  ;;  %v944_v47 = vmul.f32 %v2645_v22, %v942_v25  ;;  %v945_v54 = vadd.f32 %v943_v26, %v869_v8  ;;  %v957_v55 = vsub.f32 %v953_v38, %v955_v39  ;;  %v1975_v25 = vld [vmem:[%s2775_s22 + $0x28] sm:$0xff] }
 0x138   : > { %v958_v62 = vsub.f32 %v954_v48, %v956_v49 }
 0x139   : > { %v879_v15 = vpack.c.bf16 %v878_v14, %v877_v13  ;;  %v946_v61 = vadd.f32 %v944_v47, %v870_v10 }
 0x13b   : > { %2146 = vmatmul.mubr.bf16.vlgmr.msra.gmra.mrb[0].mxu1 %v879_v15 }
 0x13c   : > { %2170 = vmatpush3.bf16.msra.mxu1 %v2593_v16  ;;  %2185 = vmatprep.mubr.msk.bf16.mxu1 %vm2428_vm0, %v2427_v17 }
 0x13d   : > { %2171 = vmatprep.subr.bf16.mxu1 %v2427_v17 }
 0x140   : > { %2172 = vmatpush3.bf16.msra.mxu1 %v2601_v18 }
 0x141   : > { %2173 = vmatprep.subr.bf16.mxu1 %v2427_v17 }
 0x144   : > { %2174 = vmatpush3.bf16.msra.mxu1 %v2614_v19 }
 0x145   : > { %2175 = vmatprep.subr.bf16.mxu1 %v2427_v17 }
 0x148   : > { %2176 = vmatpush3.bf16.msra.mxu1 %v2627_v20 }
 0x149   : > { %2177 = vmatprep.subr.bf16.mxu1 %v2427_v17 }
 0x14c   : > { %2178 = vmatpush3.bf16.msra.mxu1 %v2634_v21 }
 0x14d   : > { %2179 = vmatprep.subr.bf16.mxu1 %v2427_v17 }
 0x150   : > { %2180 = vmatpush3.bf16.msra.mxu1 %v2686_v45 }
 0x151   : > { %2181 = vmatprep.subr.bf16.mxu1 %v2427_v17 }
 0x154   : > { %2182 = vmatpush3.bf16.msra.mxu1 %v2705_v59 }
 0x155   : > { %2183 = vmatprep.subr.bf16.mxu1 %v2427_v17 }
 0x158   : > { %2184 = vmatpush3.bf16.msra.mxu1 %v2722_v4 }
 0x159   : > { %2209 = vmatprep.subr.bf16.mxu1 %v2427_v17 }
 0x20e   : > { %v914_v33 = vpop.f32.mrb[0].mxu1 }
 0x20f   : > { %v928_v34 = vadd.f32 %v926_v32, %v914_v33  ;;  %v2147_v35 = vpop.f32.mrb[1].mxu1 }
 0x210   : > { %v917_v40 = vpop.f32.mrb[2].mxu1 }
 0x211   : > { %v930_v41 = vmax.f32 %v928_v34, 0.0  ;;  %v929_v43 = vadd.f32 %v927_v37, %v917_v40  ;;  %v2148_v44 = vpop.f32.mrb[3].mxu1 }
 0x213   : > { %1968 = vst [vmem:[%s2795_s23 + $0x10] sm:$0xff] %v930_v41  ;;  %v947_v50 = vmul.f32 %v930_v41, %v875_v11  ;;  %v961_v51 = vmul.f32 %v959_v42, %v930_v41  ;;  %v931_v52 = vmax.f32 %v929_v43, 0.0  ;;  %v1021_v30 = vmul.f32 0.8, %v930_v41 }
 0x215   : > { %v949_v56 = vmul.f32 %v2672_v36, %v947_v50  ;;  %v963_v57 = vmul.f32 %v2691_v46, %v961_v51  ;;  %1969 = vst [vmem:[%s2795_s23 + $0x18] sm:$0xff] %v931_v52  ;;  %v948_v58 = vmul.f32 %v931_v52, %v876_v12  ;;  %v962_v60 = vmul.f32 %v960_v53, %v931_v52 }
 0x216   : > { %v1022_v32 = vmul.f32 0.8, %v931_v52  ;;  %v1026_v34 = vadd.f32 %v1974_v31, %v1021_v30 }
 0x217   : > { %v951_v63 = vsub.f32 %v945_v54, %v949_v56  ;;  %v965_v0 = vadd.f32 %v963_v57, %v957_v55  ;;  %v950_v1 = vmul.f32 %v2672_v36, %v948_v58  ;;  %v964_v2 = vmul.f32 %v2691_v46, %v962_v60 }
 0x218   : > { %v1027_v39 = vadd.f32 %v1975_v25, %v1022_v32  ;;  %v1982_v25 = vld [vmem:[%s2775_s22 + $0x30] sm:$0xff] }
 0x219   : > { %v967_v3 = vmax.f32 %v951_v63, 0.0  ;;  %v971_v5 = vmax.f32 %v965_v0, 0.0  ;;  %v952_v6 = vsub.f32 %v946_v61, %v950_v1  ;;  %v966_v7 = vadd.f32 %v964_v2, %v958_v62 }
 0x21b   : > { %v969_v8 = vmin.f32 %v967_v3, 1.0  ;;  %v973_v9 = vmin.f32 %v971_v5, 1.0  ;;  %v968_v11 = vmax.f32 %v952_v6, 0.0  ;;  %v972_v12 = vmax.f32 %v966_v7, 0.0 }
 0x21d   : > { %1978 = vst [vmem:[%s2728_s25 + $0x20] sm:$0xff] %v969_v8  ;;  %1980 = vst [vmem:[%s2740_s15 + $0x20] sm:$0xff] %v973_v9  ;;  %v970_v10 = vmin.f32 %v968_v11, 1.0  ;;  %v974_v13 = vmin.f32 %v972_v12, 1.0  ;;  %v975_v14 = vmul.f32 %v973_v9, %v969_v8  ;;  %v1041_v33 = vsub.f32 1.0, %v969_v8 }
 0x21e   : > { %v1053_v42 = vadd.f32 %v2650_v23, %v973_v9  ;;  %v1055_v43 = vmul.f32 %v2655_v24, %v973_v9 }
 0x21f   : > { %1979 = vst [vmem:[%s2728_s25 + $0x28] sm:$0xff] %v970_v10  ;;  %1981 = vst [vmem:[%s2740_s15 + $0x28] sm:$0xff] %v974_v13  ;;  %v976_v15 = vmul.f32 %v974_v13, %v970_v10  ;;  %v977_v27 = vmul.f32 %v975_v14, %v930_v41  ;;  %v1042_v37 = vsub.f32 1.0, %v970_v10  ;;  %v1043_v40 = vmul.f32 %v2645_v22, %v1041_v33 }
 0x220   : > { %v1059_v41 = vsub.f32 1.0, %v973_v9  ;;  %v1054_v51 = vadd.f32 %v2650_v23, %v974_v13  ;;  %v1060_v56 = vsub.f32 1.0, %v974_v13  ;;  %v1057_v58 = vsub.f32 %v1053_v42, %v1055_v43 }
 0x221   : > { %v978_v28 = vmul.f32 %v976_v15, %v931_v52  ;;  %v1044_v50 = vmul.f32 %v2645_v22, %v1042_v37  ;;  %v1056_v52 = vmul.f32 %v2655_v24, %v974_v13  ;;  %v1045_v57 = vadd.f32 %v1043_v40, %v969_v8  ;;  %v1983_v37 = vld [vmem:[%s2775_s22 + $0x38] sm:$0xff] }
 0x223   : > { %v979_v29 = vpack.c.bf16 %v978_v28, %v977_v27  ;;  %v1046_v0 = vadd.f32 %v1044_v50, %v970_v10  ;;  %v1058_v1 = vsub.f32 %v1054_v51, %v1056_v52 }
 0x225   : > { %2166 = vmatmul.mubr.bf16.vlgmr.msra.gmra.mrb[4].mxu0 %v979_v29 }
 0x226   : > { %2190 = vmatpush3.bf16.msra.mxu0 %v2593_v16  ;;  %2205 = vmatprep.mubr.msk.bf16.mxu0 %vm2428_vm0, %v2427_v17 }
 0x227   : > { %2191 = vmatprep.subr.bf16.mxu0 %v2427_v17 }
 0x22a   : > { %2192 = vmatpush3.bf16.msra.mxu0 %v2601_v18 }
 0x22b   : > { %2193 = vmatprep.subr.bf16.mxu0 %v2427_v17 }
 0x22e   : > { %2194 = vmatpush3.bf16.msra.mxu0 %v2614_v19 }
 0x22f   : > { %2195 = vmatprep.subr.bf16.mxu0 %v2427_v17 }
 0x232   : > { %2196 = vmatpush3.bf16.msra.mxu0 %v2627_v20 }
 0x233   : > { %2197 = vmatprep.subr.bf16.mxu0 %v2427_v17 }
 0x236   : > { %2198 = vmatpush3.bf16.msra.mxu0 %v2634_v21 }
 0x237   : > { %2199 = vmatprep.subr.bf16.mxu0 %v2427_v17 }
 0x23a   : > { %2200 = vmatpush3.bf16.msra.mxu0 %v2686_v45 }
 0x23b   : > { %2201 = vmatprep.subr.bf16.mxu0 %v2427_v17 }
 0x23e   : > { %2202 = vmatpush3.bf16.msra.mxu0 %v2705_v59 }
 0x23f   : > { %2203 = vmatprep.subr.bf16.mxu0 %v2427_v17 }
 0x242   : > { %2204 = vmatpush3.bf16.msra.mxu0 %v2722_v4 }
 0x243   : > { %2229 = vmatprep.subr.bf16.mxu0 %v2427_v17 }
 0x2f8   : > { %v1014_v35 = vpop.f32.mrb[4].mxu0 }
 0x2f9   : > { %v1028_v26 = vadd.f32 %v1026_v34, %v1014_v35  ;;  %v2167_v38 = vpop.f32.mrb[5].mxu0 }
 0x2fa   : > { %v1017_v44 = vpop.f32.mrb[6].mxu0 }
 0x2fb   : > { %v1030_v47 = vmax.f32 %v1028_v26, 0.0  ;;  %v1029_v48 = vadd.f32 %v1027_v39, %v1017_v44  ;;  %v2168_v49 = vpop.f32.mrb[7].mxu0 }
 0x2fd   : > { %1976 = vst [vmem:[%s2795_s23 + $0x20] sm:$0xff] %v1030_v47  ;;  %v1047_v53 = vmul.f32 %v1030_v47, %v975_v14  ;;  %v1061_v54 = vmul.f32 %v1059_v41, %v1030_v47  ;;  %v1031_v55 = vmax.f32 %v1029_v48, 0.0  ;;  %v1121_v33 = vmul.f32 0.8, %v1030_v47 }
 0x2ff   : > { %v1049_v60 = vmul.f32 %v2672_v36, %v1047_v53  ;;  %v1063_v61 = vmul.f32 %v2691_v46, %v1061_v54  ;;  %1977 = vst [vmem:[%s2795_s23 + $0x28] sm:$0xff] %v1031_v55  ;;  %v1048_v62 = vmul.f32 %v1031_v55, %v976_v15  ;;  %v1062_v63 = vmul.f32 %v1060_v56, %v1031_v55 }
 0x300   : > { %v1122_v34 = vmul.f32 0.8, %v1031_v55  ;;  %v1126_v26 = vadd.f32 %v1982_v25, %v1121_v33 }
 0x301   : > { %v1051_v2 = vsub.f32 %v1045_v57, %v1049_v60  ;;  %v1065_v3 = vadd.f32 %v1063_v61, %v1057_v58  ;;  %v1050_v5 = vmul.f32 %v2672_v36, %v1048_v62  ;;  %v1064_v6 = vmul.f32 %v2691_v46, %v1062_v63 }
 0x302   : > { %v1127_v43 = vadd.f32 %v1983_v37, %v1122_v34 }
 0x303   : > { %v1067_v7 = vmax.f32 %v1051_v2, 0.0  ;;  %v1071_v8 = vmax.f32 %v1065_v3, 0.0  ;;  %v1052_v9 = vsub.f32 %v1046_v0, %v1050_v5  ;;  %v1066_v11 = vadd.f32 %v1064_v6, %v1058_v1 }
 0x305   : > { %v1069_v12 = vmin.f32 %v1067_v7, 1.0  ;;  %v1073_v13 = vmin.f32 %v1071_v8, 1.0  ;;  %v1068_v14 = vmax.f32 %v1052_v9, 0.0  ;;  %v1072_v15 = vmax.f32 %v1066_v11, 0.0 }
 0x307   : > { %1986 = vst [vmem:[%s2728_s25 + $0x30] sm:$0xff] %v1069_v12  ;;  %1988 = vst [vmem:[%s2740_s15 + $0x30] sm:$0xff] %v1073_v13  ;;  %v1070_v10 = vmin.f32 %v1068_v14, 1.0  ;;  %v1074_v27 = vmin.f32 %v1072_v15, 1.0  ;;  %v1075_v28 = vmul.f32 %v1073_v13, %v1069_v12  ;;  %v1141_v35 = vsub.f32 1.0, %v1069_v12 }
 0x308   : > { %v1153_v41 = vadd.f32 %v2650_v23, %v1073_v13  ;;  %v1155_v48 = vmul.f32 %v2655_v24, %v1073_v13 }
 0x309   : > { %1987 = vst [vmem:[%s2728_s25 + $0x38] sm:$0xff] %v1070_v10  ;;  %1989 = vst [vmem:[%s2740_s15 + $0x38] sm:$0xff] %v1074_v27  ;;  %v1076_v29 = vmul.f32 %v1074_v27, %v1070_v10  ;;  %v1077_v30 = vmul.f32 %v1075_v28, %v1030_v47  ;;  %v1142_v39 = vsub.f32 1.0, %v1070_v10  ;;  %v1143_v44 = vmul.f32 %v2645_v22, %v1141_v35  ;;  %v1990_v35 = vld [vmem:[%s2775_s22 + $0x40] sm:$0xff] }
 0x30a   : > { %v1159_v47 = vsub.f32 1.0, %v1073_v13  ;;  %v1154_v54 = vadd.f32 %v2650_v23, %v1074_v27  ;;  %v1160_v60 = vsub.f32 1.0, %v1074_v27  ;;  %v1157_v62 = vsub.f32 %v1153_v41, %v1155_v48 }
 0x30b   : > { %v1078_v31 = vmul.f32 %v1076_v29, %v1031_v55  ;;  %v1144_v53 = vmul.f32 %v2645_v22, %v1142_v39  ;;  %v1156_v55 = vmul.f32 %v2655_v24, %v1074_v27  ;;  %v1145_v61 = vadd.f32 %v1143_v44, %v1069_v12 }
 0x30d   : > { %v1079_v32 = vpack.c.bf16 %v1078_v31, %v1077_v30  ;;  %v1146_v3 = vadd.f32 %v1144_v53, %v1070_v10  ;;  %v1158_v5 = vsub.f32 %v1154_v54, %v1156_v55 }
 0x30f   : > { %2186 = vmatmul.mubr.bf16.vlgmr.msra.gmra.mrb[4].mxu1 %v1079_v32 }
 0x310   : > { %2210 = vmatpush3.bf16.msra.mxu1 %v2593_v16  ;;  %2225 = vmatprep.mubr.msk.bf16.mxu1 %vm2428_vm0, %v2427_v17 }
 0x311   : > { %2211 = vmatprep.subr.bf16.mxu1 %v2427_v17 }
 0x314   : > { %2212 = vmatpush3.bf16.msra.mxu1 %v2601_v18 }
 0x315   : > { %2213 = vmatprep.subr.bf16.mxu1 %v2427_v17 }
 0x318   : > { %2214 = vmatpush3.bf16.msra.mxu1 %v2614_v19 }
 0x319   : > { %2215 = vmatprep.subr.bf16.mxu1 %v2427_v17 }
 0x31c   : > { %2216 = vmatpush3.bf16.msra.mxu1 %v2627_v20 }
 0x31d   : > { %2217 = vmatprep.subr.bf16.mxu1 %v2427_v17 }
 0x320   : > { %2218 = vmatpush3.bf16.msra.mxu1 %v2634_v21 }
 0x321   : > { %2219 = vmatprep.subr.bf16.mxu1 %v2427_v17 }
 0x324   : > { %2220 = vmatpush3.bf16.msra.mxu1 %v2686_v45 }
 0x325   : > { %2221 = vmatprep.subr.bf16.mxu1 %v2427_v17 }
 0x328   : > { %2222 = vmatpush3.bf16.msra.mxu1 %v2705_v59 }
 0x329   : > { %2223 = vmatprep.subr.bf16.mxu1 %v2427_v17 }
 0x32c   : > { %2224 = vmatpush3.bf16.msra.mxu1 %v2722_v4 }
 0x32d   : > { %2249 = vmatprep.subr.bf16.mxu1 %v2427_v17 }
 0x3e2   : > { %v1114_v38 = vpop.f32.mrb[4].mxu1 }
 0x3e3   : > { %v1128_v40 = vadd.f32 %v1126_v26, %v1114_v38  ;;  %v2187_v42 = vpop.f32.mrb[5].mxu1  ;;  %v1991_v38 = vld [vmem:[%s2775_s22 + $0x48] sm:$0xff] }
 0x3e4   : > { %v1117_v49 = vpop.f32.mrb[6].mxu1 }
 0x3e5   : > { %v1130_v50 = vmax.f32 %v1128_v40, 0.0  ;;  %v1129_v51 = vadd.f32 %v1127_v43, %v1117_v49  ;;  %v2188_v52 = vpop.f32.mrb[7].mxu1 }
 0x3e7   : > { %1984 = vst [vmem:[%s2795_s23 + $0x30] sm:$0xff] %v1130_v50  ;;  %v1147_v56 = vmul.f32 %v1130_v50, %v1075_v28  ;;  %v1161_v57 = vmul.f32 %v1159_v47, %v1130_v50  ;;  %v1131_v58 = vmax.f32 %v1129_v51, 0.0 }
 0x3e9   : > { %v1149_v63 = vmul.f32 %v2672_v36, %v1147_v56  ;;  %v1163_v0 = vmul.f32 %v2691_v46, %v1161_v57  ;;  %1985 = vst [vmem:[%s2795_s23 + $0x38] sm:$0xff] %v1131_v58  ;;  %v1148_v1 = vmul.f32 %v1131_v58, %v1076_v29  ;;  %v1162_v2 = vmul.f32 %v1160_v60, %v1131_v58 }
 0x3ea   : > { %v1222_v37 = vmul.f32 0.8, %v1131_v58 }
 0x3eb   : > { %v1151_v6 = vsub.f32 %v1145_v61, %v1149_v63  ;;  %v1165_v7 = vadd.f32 %v1163_v0, %v1157_v62  ;;  %v1150_v8 = vmul.f32 %v2672_v36, %v1148_v1  ;;  %v1164_v9 = vmul.f32 %v2691_v46, %v1162_v2 }
 0x3ec   : > { %v1227_v41 = vadd.f32 %v1991_v38, %v1222_v37  ;;  %v2365_v37 = vld [vmem:[%s3105_s1] sm:$0xff]   ;;  %v1999_v38 = vld [vmem:[%s2775_s22 + $0x58] sm:$0xff] }
 0x3ed   : > { %v1167_v11 = vmax.f32 %v1151_v6, 0.0  ;;  %v1171_v12 = vmax.f32 %v1165_v7, 0.0  ;;  %v1152_v13 = vsub.f32 %v1146_v3, %v1150_v8  ;;  %v1166_v14 = vadd.f32 %v1164_v9, %v1158_v5 }
 0x3ef   : > { %v1169_v15 = vmin.f32 %v1167_v11, 1.0  ;;  %v1173_v27 = vmin.f32 %v1171_v12, 1.0  ;;  %v1168_v28 = vmax.f32 %v1152_v13, 0.0  ;;  %v1172_v29 = vmax.f32 %v1166_v14, 0.0 }
 0x3f1   : > { %1994 = vst [vmem:[%s2728_s25 + $0x40] sm:$0xff] %v1169_v15  ;;  %1996 = vst [vmem:[%s2740_s15 + $0x40] sm:$0xff] %v1173_v27  ;;  %v1170_v10 = vmin.f32 %v1168_v28, 1.0  ;;  %v1174_v30 = vmin.f32 %v1172_v29, 1.0  ;;  %v1175_v31 = vmul.f32 %v1173_v27, %v1169_v15  ;;  %v1241_v26 = vsub.f32 1.0, %v1169_v15 }
 0x3f2   : > { %v1253_v49 = vadd.f32 %v2650_v23, %v1173_v27  ;;  %v1255_v47 = vmul.f32 %v2655_v24, %v1173_v27 }
 0x3f3   : > { %1995 = vst [vmem:[%s2728_s25 + $0x48] sm:$0xff] %v1170_v10  ;;  %1997 = vst [vmem:[%s2740_s15 + $0x48] sm:$0xff] %v1174_v30  ;;  %v1176_v32 = vmul.f32 %v1174_v30, %v1170_v10  ;;  %v1177_v33 = vmul.f32 %v1175_v31, %v1130_v50  ;;  %v1242_v42 = vsub.f32 1.0, %v1170_v10  ;;  %v1243_v48 = vmul.f32 %v2645_v22, %v1241_v26 }
 0x3f4   : > { %v1254_v56 = vadd.f32 %v2650_v23, %v1174_v30  ;;  %v1256_v57 = vmul.f32 %v2655_v24, %v1174_v30  ;;  %v1260_v62 = vsub.f32 1.0, %v1174_v30  ;;  %v1257_v0 = vsub.f32 %v1253_v49, %v1255_v47 }
 0x3f5   : > { %v1178_v25 = vmul.f32 %v1176_v32, %v1131_v58  ;;  %v1244_v55 = vmul.f32 %v2645_v22, %v1242_v42  ;;  %v1245_v63 = vadd.f32 %v1243_v48, %v1169_v15 }
 0x3f6   : > { %v1258_v7 = vsub.f32 %v1254_v56, %v1256_v57 }
 0x3f7   : > { %v1179_v34 = vpack.c.bf16 %v1178_v25, %v1177_v33  ;;  %v1246_v6 = vadd.f32 %v1244_v55, %v1170_v10 }
 0x3f9   : > { %2206 = vmatmul.mubr.bf16.vlgmr.msra.gmra.mrb[8].mxu0 %v1179_v34 }
 0x3fa   : > { %2230 = vmatpush3.bf16.msra.mxu0 %v2593_v16  ;;  %2245 = vmatprep.mubr.msk.bf16.mxu0 %vm2428_vm0, %v2427_v17  ;;  %v1221_v16 = vmul.f32 0.8, %v1130_v50  ;;  %v1259_v50 = vsub.f32 1.0, %v1173_v27 }
 0x3fb   : > { %2231 = vmatprep.subr.bf16.mxu0 %v2427_v17 }
 0x3fc   : > { %v1226_v39 = vadd.f32 %v1990_v35, %v1221_v16 }
 0x3fe   : > { %2232 = vmatpush3.bf16.msra.mxu0 %v2601_v18 }
 0x3ff   : > { %2233 = vmatprep.subr.bf16.mxu0 %v2427_v17 }
 0x402   : > { %2234 = vmatpush3.bf16.msra.mxu0 %v2614_v19 }
 0x403   : > { %2235 = vmatprep.subr.bf16.mxu0 %v2427_v17 }
 0x406   : > { %2236 = vmatpush3.bf16.msra.mxu0 %v2627_v20 }
 0x407   : > { %2237 = vmatprep.subr.bf16.mxu0 %v2427_v17 }
 0x40a   : > { %2238 = vmatpush3.bf16.msra.mxu0 %v2634_v21 }
 0x40b   : > { %2239 = vmatprep.subr.bf16.mxu0 %v2427_v17 }
 0x40e   : > { %2240 = vmatpush3.bf16.msra.mxu0 %v2686_v45 }
 0x40f   : > { %2241 = vmatprep.subr.bf16.mxu0 %v2427_v17 }
 0x412   : > { %2242 = vmatpush3.bf16.msra.mxu0 %v2705_v59 }
 0x413   : > { %2243 = vmatprep.subr.bf16.mxu0 %v2427_v17 }
 0x416   : > { %2244 = vmatpush3.bf16.msra.mxu0 %v2722_v4 }
 0x4cc   : > { %v1214_v40 = vpop.f32.mrb[8].mxu0 }
 0x4cd   : > { %v1228_v43 = vadd.f32 %v1226_v39, %v1214_v40  ;;  %v2207_v44 = vpop.f32.mrb[9].mxu0 }
 0x4ce   : > { %v1217_v51 = vpop.f32.mrb[10].mxu0 }
 0x4cf   : > { %v1230_v52 = vmax.f32 %v1228_v43, 0.0  ;;  %v1229_v53 = vadd.f32 %v1227_v41, %v1217_v51  ;;  %v2208_v54 = vpop.f32.mrb[11].mxu0 }
 0x4d1   : > { %1992 = vst [vmem:[%s2795_s23 + $0x40] sm:$0xff] %v1230_v52  ;;  %v1247_v58 = vmul.f32 %v1230_v52, %v1175_v31  ;;  %v1261_v60 = vmul.f32 %v1259_v50, %v1230_v52  ;;  %v1231_v61 = vmax.f32 %v1229_v53, 0.0 }
 0x4d3   : > { %v1249_v1 = vmul.f32 %v2672_v36, %v1247_v58  ;;  %v1263_v2 = vmul.f32 %v2691_v46, %v1261_v60  ;;  %1993 = vst [vmem:[%s2795_s23 + $0x48] sm:$0xff] %v1231_v61  ;;  %v1248_v3 = vmul.f32 %v1231_v61, %v1176_v32  ;;  %v1262_v5 = vmul.f32 %v1260_v62, %v1231_v61 }
 0x4d4   : > { %v1322_v26 = vmul.f32 0.8, %v1231_v61 }
 0x4d5   : > { %v1251_v8 = vsub.f32 %v1245_v63, %v1249_v1  ;;  %v1265_v9 = vadd.f32 %v1263_v2, %v1257_v0  ;;  %v1250_v11 = vmul.f32 %v2672_v36, %v1248_v3  ;;  %v1264_v12 = vmul.f32 %v2691_v46, %v1262_v5 }
 0x4d7   : > { %v1267_v13 = vmax.f32 %v1251_v8, 0.0  ;;  %v1271_v14 = vmax.f32 %v1265_v9, 0.0  ;;  %v1252_v15 = vsub.f32 %v1246_v6, %v1250_v11  ;;  %v1266_v27 = vadd.f32 %v1264_v12, %v1258_v7 }
 0x4d9   : > { %v1269_v28 = vmin.f32 %v1267_v13, 1.0  ;;  %v1273_v29 = vmin.f32 %v1271_v14, 1.0  ;;  %v1268_v30 = vmax.f32 %v1252_v15, 0.0  ;;  %v1272_v31 = vmax.f32 %v1266_v27, 0.0 }
 0x4db   : > { %2002 = vst [vmem:[%s2728_s25 + $0x50] sm:$0xff] %v1269_v28  ;;  %2004 = vst [vmem:[%s2740_s15 + $0x50] sm:$0xff] %v1273_v29  ;;  %v1270_v10 = vmin.f32 %v1268_v30, 1.0  ;;  %v1274_v32 = vmin.f32 %v1272_v31, 1.0  ;;  %v1275_v33 = vmul.f32 %v1273_v29, %v1269_v28  ;;  %v1359_v48 = vsub.f32 1.0, %v1273_v29  ;;  %v2006_v30 = vld [vmem:[%s2775_s22 + $0x60] sm:$0xff] }
 0x4dd   : > { %2003 = vst [vmem:[%s2728_s25 + $0x58] sm:$0xff] %v1270_v10  ;;  %2005 = vst [vmem:[%s2740_s15 + $0x58] sm:$0xff] %v1274_v32  ;;  %v1276_v25 = vmul.f32 %v1274_v32, %v1270_v10  ;;  %v1277_v34 = vmul.f32 %v1275_v33, %v1230_v52  ;;  %v1356_v50 = vmul.f32 %v2655_v24, %v1274_v32  ;;  %v1360_v56 = vsub.f32 1.0, %v1274_v32 }
 0x4df   : > { %v1278_v16 = vmul.f32 %v1276_v25, %v1231_v61 }
 0x4e1   : > { %v1279_v35 = vpack.c.bf16 %v1278_v16, %v1277_v34 }
 0x4e3   : > { %2226 = vmatmul.mubr.bf16.vlgmr.msra.gmra.mrb[8].mxu1 %v1279_v35 }
 0x4e4   : > { %2250 = vmatpush3.bf16.msra.mxu1 %v2365_v37  ;;  %2265 = vmatprep.mubr.msk.bf16.mxu1 %vm2428_vm0, %v2427_v17 }
 0x4e5   : > { %2251 = vmatprep.subr.bf16.mxu1 %v2427_v17 }
 0x4e8   : > { %2252 = vmatpush3.bf16.msra.mxu1 %v2601_v18  ;;  %v1321_v18 = vmul.f32 0.8, %v1230_v52  ;;  %v1354_v52 = vadd.f32 %v2650_v23, %v1274_v32 }
 0x4e9   : > { %2253 = vmatprep.subr.bf16.mxu1 %v2427_v17 }
 0x4ec   : > { %2254 = vmatpush3.bf16.msra.mxu1 %v2614_v19  ;;  %v1998_v19 = vld [vmem:[%s2775_s22 + $0x50] sm:$0xff] }
 0x4ed   : > { %2255 = vmatprep.subr.bf16.mxu1 %v2427_v17  ;;  %v1326_v39 = vadd.f32 %v1998_v19, %v1321_v18  ;;  %v2366_v19 = vld [vmem:[%s3109_s5] ss:$0 sm:$0xff] }
 0x4f0   : > { %2256 = vmatpush3.bf16.msra.mxu1 %v2627_v20  ;;  %v1341_v20 = vsub.f32 1.0, %v1269_v28 }
 0x4f1   : > { %2257 = vmatprep.subr.bf16.mxu1 %v2427_v17 }
 0x4f2   : > { %v1343_v44 = vmul.f32 %v2645_v22, %v1341_v20  ;;  %v2367_v20 = vld [vmem:[%s3111_s7] ss:$0 sm:$0xff] }
 0x4f4   : > { %2258 = vmatpush3.bf16.msra.mxu1 %v2634_v21  ;;  %v1342_v21 = vsub.f32 1.0, %v1270_v10  ;;  %v1345_v57 = vadd.f32 %v1343_v44, %v1269_v28 }
 0x4f5   : > { %2259 = vmatprep.subr.bf16.mxu1 %v2427_v17 }
 0x4f6   : > { %v1344_v51 = vmul.f32 %v2645_v22, %v1342_v21 }
 0x4f8   : > { %2260 = vmatpush3.bf16.msra.mxu1 %v2686_v45  ;;  %v1327_v45 = vadd.f32 %v1999_v38, %v1322_v26  ;;  %v1346_v22 = vadd.f32 %v1344_v51, %v1270_v10  ;;  %v2007_v10 = vld [vmem:[%s2775_s22 + $0x68] sm:$0xff] }
 0x4f9   : > { %2261 = vmatprep.subr.bf16.mxu1 %v2427_v17 }
 0x4fc   : > { %2262 = vmatpush3.bf16.msra.mxu1 %v2705_v59  ;;  %v1353_v59 = vadd.f32 %v2650_v23, %v1273_v29  ;;  %v1358_v23 = vsub.f32 %v1354_v52, %v1356_v50  ;;  %v2369_v52 = vld [vmem:[%s3110_s6] ss:$0 sm:$0xff] }
 0x4fd   : > { %2263 = vmatprep.subr.bf16.mxu1 %v2427_v17  ;;  %v1355_v17 = vmul.f32 %v2655_v24, %v1273_v29 }
 0x4ff   : > { %v1357_v58 = vsub.f32 %v1353_v59, %v1355_v17 }
 0x500   : > { %2264 = vmatpush3.bf16.msra.mxu1 %v2722_v4 }
 0x5b6   : > { %v1314_v40 = vpop.f32.mrb[8].mxu1 }
 0x5b7   : > { %v1328_v42 = vadd.f32 %v1326_v39, %v1314_v40  ;;  %v2227_v43 = vpop.f32.mrb[9].mxu1  ;;  %v2368_v39 = vld [vmem:[%s3112_s8] ss:$0 sm:$0xff] }
 0x5b8   : > { %v1317_v41 = vpop.f32.mrb[10].mxu1 }
 0x5b9   : > { %v1330_v4 = vmax.f32 %v1328_v42, 0.0  ;;  %v1329_v49 = vadd.f32 %v1327_v45, %v1317_v41  ;;  %v2228_v47 = vpop.f32.mrb[11].mxu1 }
 0x5bb   : > { %2000 = vst [vmem:[%s2795_s23 + $0x50] sm:$0xff] %v1330_v4  ;;  %v1347_v53 = vmul.f32 %v1330_v4, %v1275_v33  ;;  %v1361_v54 = vmul.f32 %v1359_v48, %v1330_v4  ;;  %v1331_v55 = vmax.f32 %v1329_v49, 0.0  ;;  %v1421_v29 = vmul.f32 0.8, %v1330_v4 }
 0x5bd   : > { %v1349_v60 = vmul.f32 %v2672_v36, %v1347_v53  ;;  %v1363_v61 = vmul.f32 %v2691_v46, %v1361_v54  ;;  %2001 = vst [vmem:[%s2795_s23 + $0x58] sm:$0xff] %v1331_v55  ;;  %v1348_v62 = vmul.f32 %v1331_v55, %v1276_v25  ;;  %v1362_v63 = vmul.f32 %v1360_v56, %v1331_v55  ;;  %v2370_v53 = vld [vmem:[%s3113_s9] ss:$0 sm:$0xff] }
 0x5be   : > { %v1422_v31 = vmul.f32 0.8, %v1331_v55  ;;  %v1426_v33 = vadd.f32 %v2006_v30, %v1421_v29 }
 0x5bf   : > { %v1351_v0 = vsub.f32 %v1345_v57, %v1349_v60  ;;  %v1365_v24 = vadd.f32 %v1363_v61, %v1357_v58  ;;  %v1350_v1 = vmul.f32 %v2672_v36, %v1348_v62  ;;  %v1364_v2 = vmul.f32 %v2691_v46, %v1362_v63 }
 0x5c0   : > { %v1427_v37 = vadd.f32 %v2007_v10, %v1422_v31 }
 0x5c1   : > { %v1367_v3 = vmax.f32 %v1351_v0, 0.0  ;;  %v1371_v5 = vmax.f32 %v1365_v24, 0.0  ;;  %v1352_v6 = vsub.f32 %v1346_v22, %v1350_v1  ;;  %v1366_v7 = vadd.f32 %v1364_v2, %v1358_v23 }
 0x5c3   : > { %v1369_v8 = vmin.f32 %v1367_v3, 1.0  ;;  %v1373_v9 = vmin.f32 %v1371_v5, 1.0  ;;  %v1368_v11 = vmax.f32 %v1352_v6, 0.0  ;;  %v1372_v12 = vmax.f32 %v1366_v7, 0.0 }
 0x5c5   : > { %2010 = vst [vmem:[%s2728_s25 + $0x60] sm:$0xff] %v1369_v8  ;;  %2012 = vst [vmem:[%s2740_s15 + $0x60] sm:$0xff] %v1373_v9  ;;  %v1370_v13 = vmin.f32 %v1368_v11, 1.0  ;;  %v1374_v14 = vmin.f32 %v1372_v12, 1.0  ;;  %v1375_v15 = vmul.f32 %v1373_v9, %v1369_v8  ;;  %v1441_v32 = vsub.f32 1.0, %v1369_v8 }
 0x5c6   : > { %v1453_v38 = vadd.f32 %v2367_v20, %v1373_v9  ;;  %v1455_v40 = vmul.f32 %v2368_v39, %v1373_v9  ;;  %v1459_v42 = vsub.f32 1.0, %v1373_v9 }
 0x5c7   : > { %2011 = vst [vmem:[%s2728_s25 + $0x68] sm:$0xff] %v1370_v13  ;;  %2013 = vst [vmem:[%s2740_s15 + $0x68] sm:$0xff] %v1374_v14  ;;  %v1376_v36 = vmul.f32 %v1374_v14, %v1370_v13  ;;  %v1377_v27 = vmul.f32 %v1375_v15, %v1330_v4  ;;  %v1442_v34 = vsub.f32 1.0, %v1370_v13  ;;  %v1443_v26 = vmul.f32 %v2366_v19, %v1441_v32 }
 0x5c8   : > { %v1454_v59 = vadd.f32 %v2367_v20, %v1374_v14  ;;  %v1456_v17 = vmul.f32 %v2368_v39, %v1374_v14  ;;  %v1460_v49 = vsub.f32 1.0, %v1374_v14  ;;  %v1457_v51 = vsub.f32 %v1453_v38, %v1455_v40  ;;  %v1639_v20 = vld [vmem:[%s2795_s23 + $0x30] sm:$0xff] (%p2547_p5)  ;;  %v1641_v38 = vld [vmem:[%s2795_s23 + $0x38] sm:$0xff] (%p2547_p5)  ;;  %v1643_v39 = vld [vmem:[%s2795_s23 + $0x40] sm:$0xff] (%p2547_p5) }
 0x5c9   : > { %v1378_v46 = vmul.f32 %v1376_v36, %v1331_v55  ;;  %v1444_v44 = vmul.f32 %v2366_v19, %v1442_v34  ;;  %v1445_v47 = vadd.f32 %v1443_v26, %v1369_v8  ;;  %v1635_v19 = vld [vmem:[%s2795_s23 + $0x20] sm:$0xff] (%p2547_p5)  ;;  %v1637_v26 = vld [vmem:[%s2795_s23 + $0x28] sm:$0xff] (%p2547_p5) }
 0x5ca   : > { %v1458_v58 = vsub.f32 %v1454_v59, %v1456_v17  ;;  %v1645_v40 = vld [vmem:[%s2795_s23 + $0x48] sm:$0xff] (%p2547_p5) }
 0x5cb   : > { %v1379_v28 = vpack.c.bf16 %v1378_v46, %v1377_v27  ;;  %v1446_v57 = vadd.f32 %v1444_v44, %v1370_v13  ;;  %v2015_v27 = vld [vmem:[%s2775_s22 + $0x78] sm:$0xff] }
 0x5cd   : > { %2246 = vmatmul.mubr.bf16.vlgmr.msra.gmra.mrb[12].mxu0 %v1379_v28 }
 0x6a0   : > { %v1414_v25 = vpop.f32.mrb[12].mxu0 }
 0x6a1   : > { %v1428_v16 = vadd.f32 %v1426_v33, %v1414_v25  ;;  %v2247_v35 = vpop.f32.mrb[13].mxu0 }
 0x6a2   : > { %v1417_v18 = vpop.f32.mrb[14].mxu0  ;;  %v1629_v35 = vld [vmem:[%s2795_s23 + $0x8] sm:$0xff] (%p2547_p5) }
 0x6a3   : > { %v1430_v21 = vmax.f32 %v1428_v16, 0.0  ;;  %v1429_v43 = vadd.f32 %v1427_v37, %v1417_v18  ;;  %v2248_v45 = vpop.f32.mrb[15].mxu0  ;;  %v1627_v16 = vld [vmem:[%s2795_s23] sm:$0xff] (%p2547_p5)  ;;  %v1631_v37 = vld [vmem:[%s2795_s23 + $0x10] sm:$0xff] (%p2547_p5)  ;;  %v1633_v18 = vld [vmem:[%s2795_s23 + $0x18] sm:$0xff] (%p2547_p5) }
 0x6a5   : > { %2008 = vst [vmem:[%s2795_s23 + $0x60] sm:$0xff] %v1430_v21  ;;  %v1447_v41 = vmul.f32 %v1430_v21, %v1375_v15  ;;  %v1461_v4 = vmul.f32 %v1459_v42, %v1430_v21  ;;  %v1431_v48 = vmax.f32 %v1429_v43, 0.0  ;;  %v1521_v14 = vmul.f32 0.8, %v1430_v21  ;;  %v2014_v15 = vld [vmem:[%s2775_s22 + $0x70] sm:$0xff]  ;;  %s2034_s22 = sshll.u32 (%p2547_p5), %s2417_s24, 4 }
 0x6a6   : > { %s1569_s20 = scalar_lea.vmem (%p2547_p5), %s3114_s10, %s2034_s22  ;;  %v1649_v42 = vld [vmem:[%s2795_s23 + $0x58] sm:$0xff] (%p2547_p5) }
 0x6a7   : > { %v1449_v50 = vmul.f32 %v2369_v52, %v1447_v41  ;;  %v1463_v54 = vmul.f32 %v2370_v53, %v1461_v4  ;;  %2009 = vst [vmem:[%s2795_s23 + $0x68] sm:$0xff] %v1431_v48  ;;  %v1448_v55 = vmul.f32 %v1431_v48, %v1376_v36  ;;  %v1462_v56 = vmul.f32 %v1460_v49, %v1431_v48 }
 0x6a8   : > { %v1522_v36 = vmul.f32 0.8, %v1431_v48  ;;  %v1526_v46 = vadd.f32 %v2014_v15, %v1521_v14  ;;  %1628 = vst [vmem:[%s1569_s20] sm:$0xff] (%p2547_p5), %v1627_v16  ;;  %1630 = vst [vmem:[%s1569_s20 + $0x8] sm:$0xff] (%p2547_p5), %v1629_v35 }
 0x6a9   : > { %v1450_v60 = vmul.f32 %v2369_v52, %v1448_v55  ;;  %v1464_v61 = vmul.f32 %v2370_v53, %v1462_v56  ;;  %v1451_v62 = vsub.f32 %v1445_v47, %v1449_v50  ;;  %v1465_v63 = vadd.f32 %v1463_v54, %v1457_v51  ;;  %1632 = vst [vmem:[%s1569_s20 + $0x20] sm:$0xff] (%p2547_p5), %v1631_v37 }
 0x6aa   : > { %v1527_v31 = vadd.f32 %v2015_v27, %v1522_v36  ;;  %1634 = vst [vmem:[%s1569_s20 + $0x28] sm:$0xff] (%p2547_p5), %v1633_v18  ;;  %1636 = vst [vmem:[%s1569_s20 + $0x40] sm:$0xff] (%p2547_p5), %v1635_v19 }
 0x6ab   : > { %v1452_v22 = vsub.f32 %v1446_v57, %v1450_v60  ;;  %v1466_v23 = vadd.f32 %v1464_v61, %v1458_v58  ;;  %v1467_v0 = vmax.f32 %v1451_v62, 0.0  ;;  %v1471_v24 = vmax.f32 %v1465_v63, 0.0  ;;  %1638 = vst [vmem:[%s1569_s20 + $0x48] sm:$0xff] (%p2547_p5), %v1637_v26  ;;  %1640 = vst [vmem:[%s1569_s20 + $0x60] sm:$0xff] (%p2547_p5), %v1639_v20 }
 0x6ac   : > { %1642 = vst [vmem:[%s1569_s20 + $0x68] sm:$0xff] (%p2547_p5), %v1641_v38  ;;  %1644 = vst [vmem:[%s1569_s20 + $0x80] sm:$0xff] (%p2547_p5), %v1643_v39  ;;  %v1651_v43 = vld [vmem:[%s2795_s23 + $0x60] sm:$0xff] (%p2547_p5) }
 0x6ad   : > { %v1468_v1 = vmax.f32 %v1452_v22, 0.0  ;;  %v1469_v2 = vmin.f32 %v1467_v0, 1.0  ;;  %v1472_v3 = vmax.f32 %v1466_v23, 0.0  ;;  %v1473_v5 = vmin.f32 %v1471_v24, 1.0  ;;  %1646 = vst [vmem:[%s1569_s20 + $0x88] sm:$0xff] (%p2547_p5), %v1645_v40  ;;  %1650 = vst [vmem:[%s1569_s20 + $0xa8] sm:$0xff] (%p2547_p5), %v1649_v42 }
 0x6ae   : > { %v1653_v45 = vld [vmem:[%s2795_s23 + $0x68] sm:$0xff] (%p2547_p5)  ;;  %1652 = vst [vmem:[%s1569_s20 + $0xc0] sm:$0xff] (%p2547_p5), %v1651_v43 }
 0x6af   : > { %v1470_v6 = vmin.f32 %v1468_v1, 1.0  ;;  %v1474_v7 = vmin.f32 %v1472_v3, 1.0  ;;  %v1475_v8 = vmul.f32 %v1473_v5, %v1469_v2  ;;  %2018 = vst [vmem:[%s2728_s25 + $0x70] sm:$0xff] %v1469_v2  ;;  %2020 = vst [vmem:[%s2740_s15 + $0x70] sm:$0xff] %v1473_v5 }
 0x6b0   : > { %1654 = vst [vmem:[%s1569_s20 + $0xc8] sm:$0xff] (%p2547_p5), %v1653_v45 }
 0x6b1   : > { %v1476_v9 = vmul.f32 %v1474_v7, %v1470_v6  ;;  %v1477_v11 = vmul.f32 %v1475_v8, %v1430_v21  ;;  %2019 = vst [vmem:[%s2728_s25 + $0x78] sm:$0xff] %v1470_v6  ;;  %2021 = vst [vmem:[%s2740_s15 + $0x78] sm:$0xff] %v1474_v7  ;;  %v1647_v21 = vld [vmem:[%s2795_s23 + $0x50] sm:$0xff] (%p2547_p5) }
 0x6b2   : > { %1648 = vst [vmem:[%s1569_s20 + $0xa0] sm:$0xff] (%p2547_p5), %v1647_v21 }
 0x6b3   : > { %v1478_v12 = vmul.f32 %v1476_v9, %v1431_v48 }
 0x6b5   : > { %v1479_v13 = vpack.c.bf16 %v1478_v12, %v1477_v11 }
 0x6b7   : > { %2266 = vmatmul.mubr.bf16.vlgmr.msra.gmra.mrb[12].mxu1 %v1479_v13 }
 0x78a   : > { %v1514_v28 = vpop.f32.mrb[12].mxu1 }
 0x78b   : > { %v1528_v29 = vadd.f32 %v1526_v46, %v1514_v28  ;;  %v2267_v30 = vpop.f32.mrb[13].mxu1  ;;  %1563 = sbr.rel (!%p2547_p5) target bundleno = 1946 (0x79a), region = 106 }
 0x78c   : > { %v1517_v10 = vpop.f32.mrb[14].mxu1 }
 0x78d   : > { %v1530_v32 = vmax.f32 %v1528_v29, 0.0  ;;  %v1529_v33 = vadd.f32 %v1527_v31, %v1517_v10  ;;  %v2268_v25 = vpop.f32.mrb[15].mxu1 }
 0x78f   : > { %2016 = vst [vmem:[%s2795_s23 + $0x70] sm:$0xff] %v1530_v32  ;;  %v1531_v34 = vmax.f32 %v1529_v33, 0.0 }
 0x791   : > { %2017 = vst [vmem:[%s2795_s23 + $0x78] sm:$0xff] %v1531_v34 }
 0x796   : > { %v1655_v44 = vld [vmem:[%s2795_s23 + $0x70] sm:$0xff] }
 0x797   : > { %1656 = vst [vmem:[%s1569_s20 + $0xe0] sm:$0xff] %v1655_v44 }
 0x798   : > { %v1657_v59 = vld [vmem:[%s2795_s23 + $0x78] sm:$0xff] }
 0x799   : > { %1658 = vst [vmem:[%s1569_s20 + $0xe8] sm:$0xff] %v1657_v59 }
 0x79a PF: > { %s2035_s0 = sshll.u32 %s2417_s24, 8  ;;  %s1690_s29 = sshll.u32 %s2728_s25, 4  ;;  %s1691_s29 = int_to_ptr.vmem [resolvable:$true] %s1690_s29 }
 0x79b   : > { %s1673_s22 = scalar_lea.hbm %s3115_s11, %s2035_s0  ;;  %s2429_s23 = smov 256  }
 0x79c   : > { %2269 = sst [smem:[#allocation12]] (%p2547_p5), %s2429_s23  ;;  %s2430_s28 = smov 512  }
 0x79d   : > { %2270 = sst [smem:[#allocation12 + $0x1]] (%p2547_p5), %s2430_s28  ;;  %s2431_s19 = smov 2  }
 0x79e   : > { %2271 = sst [smem:[#allocation12 + $0x2]] (%p2547_p5), %s2431_s19  ;;  %s2432_s20 = smov 128  }
 0x79f   : > { %2272 = sst [smem:[#allocation12 + $0x3]] (%p2547_p5), %s2432_s20  ;;  %s2433_s24 = smov 8  }
 0x7a0   : > { %2273 = sst [smem:[#allocation12 + $0x4]] (%p2547_p5), %s2432_s20  ;;  %s2434_s25 = smov [#allocation11]  }
 0x7a1   : > { %2274 = sst [smem:[#allocation12 + $0x5]] (%p2547_p5), %s2433_s24  ;;  %s2435_s18 = smov 0  }
 0x7a2   : > { %2275 = dma.general (%p2547_p5), %s1691_s29, 2048, %s1673_s22, %s1552_s14, %s2434_s25, [#allocation12], %s2435_s18, 0  }
 0x7a3   : > { %s1721_s28 = scalar_lea.hbm %s3116_s12, %s2035_s0  ;;  %s1738_s19 = sshll.u32 %s2740_s15, 4  ;;  %s1739_s19 = int_to_ptr.vmem [resolvable:$true] %s1738_s19 }
 0x7a4   : > { %s2436_s20 = smov 256   ;;  %s2437_s24 = smov 512  }
 0x7a5   : > { %2276 = sst [smem:[#allocation14]] (%p2547_p5), %s2436_s20  ;;  %s2438_s14 = smov 2  }
 0x7a6   : > { %2277 = sst [smem:[#allocation14 + $0x1]] (%p2547_p5), %s2437_s24  ;;  %s2439_s29 = smov 128  }
 0x7a7   : > { %2278 = sst [smem:[#allocation14 + $0x2]] (%p2547_p5), %s2438_s14  ;;  %s2440_s22 = smov 8  }
 0x7a8   : > { %2279 = sst [smem:[#allocation14 + $0x3]] (%p2547_p5), %s2439_s29  ;;  %s2441_s0 = smov [#allocation13]  }
 0x7a9   : > { %2280 = sst [smem:[#allocation14 + $0x4]] (%p2547_p5), %s2439_s29  ;;  %s2442_s15 = smov 0  }
 0x7aa   : > { %2281 = sst [smem:[#allocation14 + $0x5]] (%p2547_p5), %s2440_s22 }
 0x7ab   : > { %2282 = dma.general (%p2547_p5), %s1739_s19, 2048, %s1721_s28, %s1557_s17, %s2441_s0, [#allocation14], %s2442_s15, 0  }
 0x7ac PF: > { %s1773_s25 = sand.u32 1, %s2405_s21   ;;  %p2286_p1 = pnand %p1938_p10, %p2558_p9 }
 0x7ad   : > { %s1774_s18 = scalar_lea.sflag [#allocation8], %s1773_s25 }
 0x7ae   : > { %2396 = dma.done.wait (!%p2286_p1), %s1774_s18, 2048  }
 0x7af   : > { %2398 = vsyncadd (!%p2286_p1), %s1774_s18, 4294965248  ;;  %s1783_s27 = scalar_lea.sflag [#allocation10], %s1773_s25 }
 0x7b0   : > { %2400 = dma.done.wait (!%p2286_p1), %s1783_s27, 2048  }
 0x7b1   : > { %2402 = vsyncadd (!%p2286_p1), %s1783_s27, 4294965248  ;;  %s29_s26 = sadd.s32 1, %s2425_s26   ;;  %s3130_s21 = sld [smem:[#allocation17_spill]] }
 0x7b2   : > { %p26_p2 = scmp.ge.s32.totalorder %s29_s26, 4   ;;  %s3131_s22 = sld [smem:[#allocation18_spill]] }
 0x7b3   : > { %s3132_s23 = sld [smem:[#allocation21_spill]]  ;;  %s3133_s24 = sld [smem:[#allocation19_spill]] }
 0x7b4   : > { %s3134_s25 = sld [smem:[#allocation20_spill]]  ;;  %28 = sbr.rel (!%p26_p2) target bundleno = 8 (0x8), region = 256 }
 0x7bb   :  { %1788 = vsyncpa [#allocation8], 1 }
 0x7bc   :  { %1790 = vsyncpa [#allocation8 + $0x1], 1 }
 0x7bd   :  { %1791 = vsyncpa [#allocation10], 1 }
 0x7be   :  { %1793 = vsyncpa [#allocation10 + $0x1], 1 }

</bundles_post_ra>
